<compile_context>
chip_gen: v6e
topology: v6e:2x2x1
jax: 0.10.0
libtpu: 0.0.40
codegen_flags: <defaults>
</compile_context>

<pallas_src>
import jax
import jax.numpy as jnp
from jax.experimental import pallas as pl
from jax.experimental.pallas import tpu as pltpu


def _round_up(x, m):
    return (x + m - 1) // m * m


# ----------------------------------------------------------------------------
# Kernel: whole 2-layer LSTM recurrence + last-valid gather in one invocation.
# ----------------------------------------------------------------------------
def _lstm_kernel(nsteps_ref, tok_ref, idx_ref, emb_ref,
                 w0_ref, b0_ref, w1_ref, b1_ref, out_ref):
    Np, Hp = out_ref.shape
    Vp = emb_ref.shape[0]
    cdt = emb_ref.dtype                       # matmul/compute dtype (f32 or bf16)

    n_steps = nsteps_ref[0]                   # dynamic trip count (longest length)
    idx = idx_ref[...]                        # (Np, 1) int32; -1 for padded rows
    emb = emb_ref[...]                        # (Vp, Dp)  padded embedding table
    w0 = w0_ref[...]                          # (Dp+Hp, 4Hp) fused [W_ih; W_hh] layer 0
    b0 = b0_ref[...]                          # (1, 4Hp) f32
    w1 = w1_ref[...]                          # (2Hp, 4Hp)  fused layer 1
    b1 = b1_ref[...]                          # (1, 4Hp) f32

    # Hoisted (JAX does not CSE broadcasts inside loops).
    vocab_iota = jax.lax.broadcasted_iota(jnp.int32, (Np, Vp), 1)

    def cell(inp, c, w, b):
        # One fused MXU matmul; gates in f32; PyTorch gate order i, f, g, o,
        # each gate occupying its own lane-aligned Hp-wide slab.
        g = jnp.dot(inp, w, preferred_element_type=jnp.float32) + b
        i = jax.nn.sigmoid(g[:, 0 * Hp:1 * Hp])
        f = jax.nn.sigmoid(g[:, 1 * Hp:2 * Hp])
        gg = jnp.tanh(g[:, 2 * Hp:3 * Hp])
        o = jax.nn.sigmoid(g[:, 3 * Hp:4 * Hp])
        c_new = f * c + i * gg
        h_new = o * jnp.tanh(c_new)
        return h_new, c_new

    def step(t, carry):
        h1, c1, h2, c2, out = carry

        # Fused embedding gather: one-hot(tokens_t) @ table on the MXU
        # (no (T,N,D) embedded tensor ever written to / read from HBM).
        tok = tok_ref[t]                                        # (Np, 1) int32
        onehot = (vocab_iota == tok).astype(cdt)                # (Np, Vp)
        xt = jnp.dot(onehot, emb,
                     preferred_element_type=jnp.float32).astype(cdt)   # (Np, Dp)

        # Layer 0: fused [x_t | h1] @ [[W_ih];[W_hh]]
        h1f, c1 = cell(jnp.concatenate([xt, h1], axis=1), c1, w0, b0)
        h1 = h1f.astype(cdt)
        # Layer 1 (inter-layer dropout = 0 in the reference module)
        h2f, c2 = cell(jnp.concatenate([h1, h2], axis=1), c2, w1, b1)
        h2 = h2f.astype(cdt)

        # Fused "gather hidden at last non-pad position".
        out = jnp.where(idx == t, h2f, out)
        return h1, c1, h2, c2, out

    zf = jnp.zeros((Np, Hp), jnp.float32)
    zc = jnp.zeros((Np, Hp), cdt)
    _, _, _, _, out = jax.lax.fori_loop(0, n_steps, step, (zc, zf, zc, zf, zf))
    out_ref[...] = out


# ----------------------------------------------------------------------------
# Wrapper: padding / weight fusion (layout plumbing only) + pallas_call.
# ----------------------------------------------------------------------------
def question_lstm_encoder_pallas(x_tokens, embed_w, params, null_idx,
                                 compute_dtype=jnp.float32):
    """x_tokens: (N, T) int token ids.  Returns (N, H) float32."""
    N, T = x_tokens.shape
    V, D = embed_w.shape
    H = params["whh0"].shape[1]

    LANE, SUB = 128, 8
    Hp = _round_up(H, LANE)          # lane-aligned gates
    Dp = _round_up(D, LANE)          # lane-aligned [x | h] concat boundary
    Vp = _round_up(V, LANE)          # lane-aligned one-hot
    Np = _round_up(N, SUB)           # sublane-aligned batch

    # Last valid position per row; dynamic number of recurrence steps to run.
    idx = (jnp.sum(x_tokens != null_idx, axis=-1) - 1).astype(jnp.int32)        # (N,)
    n_steps = jnp.clip(jnp.max(idx) + 1, 0, T).astype(jnp.int32).reshape(1)     # (1,)
    idx_p = jnp.full((Np, 1), -1, jnp.int32).at[:N, 0].set(idx)

    # Tokens, time-major, batch padded with <pad> (padded rows never selected).
    tok = jnp.full((Np, T), null_idx, jnp.int32).at[:N, :].set(x_tokens.astype(jnp.int32))
    tok_tm = jnp.transpose(tok, (1, 0)).reshape(T, Np, 1)                       # (T, Np, 1)

    # Padded embedding table (extra rows/cols are zero).
    emb_p = jnp.zeros((Vp, Dp), compute_dtype).at[:V, :D].set(embed_w.astype(compute_dtype))

    # Fused + padded LSTM weights: stacked [[W_ih]; [W_hh]], each gate (i,f,g,o)
    # in its own Hp-wide lane-aligned slab.  Zero padding => padded hidden units
    # receive zero gate pre-activations and stay exactly 0 through the recurrence.
    def pack_layer(wih, whh, bias, in_dim, in_pad):
        w = jnp.zeros((in_pad + Hp, 4 * Hp), compute_dtype)
        b = jnp.zeros((1, 4 * Hp), jnp.float32)
        wih_t = wih.T.astype(compute_dtype)   # (in_dim, 4H)
        whh_t = whh.T.astype(compute_dtype)   # (H, 4H)
        for k in range(4):
            w = w.at[:in_dim, k * Hp:k * Hp + H].set(wih_t[:, k * H:(k + 1) * H])
            w = w.at[in_pad:in_pad + H, k * Hp:k * Hp + H].set(whh_t[:, k * H:(k + 1) * H])
            b = b.at[:, k * Hp:k * Hp + H].set(
                bias[k * H:(k + 1) * H].astype(jnp.float32)[None, :])
        return w, b

    w0, b0 = pack_layer(params["wih0"], params["whh0"],
                        params["bih0"] + params["bhh0"], D, Dp)
    w1, b1 = pack_layer(params["wih1"], params["whh1"],
                        params["bih1"] + params["bhh1"], H, Hp)

    vmem = pltpu.MemorySpace.VMEM
    smem = pltpu.MemorySpace.SMEM
    out = pl.pallas_call(
        _lstm_kernel,
        out_shape=jax.ShapeDtypeStruct((Np, Hp), jnp.float32),
        in_specs=[
            pl.BlockSpec(memory_space=smem),   # n_steps (1,)      scalar in SMEM
            pl.BlockSpec(memory_space=vmem),   # tokens  (T, Np, 1)
            pl.BlockSpec(memory_space=vmem),   # idx     (Np, 1)
            pl.BlockSpec(memory_space=vmem),   # embedding table   (Vp, Dp)
            pl.BlockSpec(memory_space=vmem),   # fused W layer 0   (Dp+Hp, 4Hp)
            pl.BlockSpec(memory_space=vmem),   # bias layer 0      (1, 4Hp)
            pl.BlockSpec(memory_space=vmem),   # fused W layer 1   (2Hp, 4Hp)
            pl.BlockSpec(memory_space=vmem),   # bias layer 1      (1, 4Hp)
        ],
        out_specs=pl.BlockSpec(memory_space=vmem),
    )(n_steps, tok_tm, idx_p, emb_p, w0, b0, w1, b1)
    return out[:N, :H]


# ----------------------------------------------------------------------------
# Pure-JAX reference (for correctness checking against the kernel).
# ----------------------------------------------------------------------------
def question_lstm_encoder_ref(x_tokens, embed_w, params, null_idx):
    N, T = x_tokens.shape
    H = params["whh0"].shape[1]
    emb = embed_w[x_tokens]                       # (N, T, D)
    emb_tm = jnp.transpose(emb, (1, 0, 2))        # (T, N, D)
    b0 = params["bih0"] + params["bhh0"]
    b1 = params["bih1"] + params["bhh1"]

    def cell(x_in, h, c, wih, whh, b):
        g = x_in @ wih.T + h @ whh.T + b
        i = jax.nn.sigmoid(g[:, :H])
        f = jax.nn.sigmoid(g[:, H:2 * H])
        gg = jnp.tanh(g[:, 2 * H:3 * H])
        o = jax.nn.sigmoid(g[:, 3 * H:])
        c_new = f * c + i * gg
        return o * jnp.tanh(c_new), c_new

    def step(carry, xt):
        h1, c1, h2, c2 = carry
        h1n, c1n = cell(xt, h1, c1, params["wih0"], params["whh0"], b0)
        h2n, c2n = cell(h1n, h2, c2, params["wih1"], params["whh1"], b1)
        return (h1n, c1n, h2n, c2n), h2n

    init = tuple(jnp.zeros((N, H), jnp.float32) for _ in range(4))
    _, hs = jax.lax.scan(step, init, emb_tm)      # hs: (T, N, H)
    idx = jnp.sum(x_tokens != null_idx, axis=-1) - 1
    return hs[idx, jnp.arange(N), :]              # (N, H)


# ----------------------------------------------------------------------------
if __name__ == "__main__":
    token_to_idx = {"<pad>": 0, "<s>": 1, "</s>": 2,
                    "where": 3, "is": 4, "the": 5, "red": 6,
                    "chair": 7, "located": 8, "room": 9}
    V = len(token_to_idx)
    NULL = token_to_idx["<pad>"]
    D = 64   # wordvec_dim
    H = 64   # rnn_dim
    N, T = 2, 8

    key = jax.random.PRNGKey(0)
    keys = jax.random.split(key, 10)

    embed_w = jax.random.uniform(keys[0], (V, D), jnp.float32, -0.1, 0.1)
    s = 1.0 / jnp.sqrt(H)
    params = {
        "wih0": jax.random.uniform(keys[1], (4 * H, D), jnp.float32, -s, s),
        "whh0": jax.random.uniform(keys[2], (4 * H, H), jnp.float32, -s, s),
        "bih0": jax.random.uniform(keys[3], (4 * H,), jnp.float32, -s, s),
        "bhh0": jax.random.uniform(keys[4], (4 * H,), jnp.float32, -s, s),
        "wih1": jax.random.uniform(keys[5], (4 * H, H), jnp.float32, -s, s),
        "whh1": jax.random.uniform(keys[6], (4 * H, H), jnp.float32, -s, s),
        "bih1": jax.random.uniform(keys[7], (4 * H,), jnp.float32, -s, s),
        "bhh1": jax.random.uniform(keys[8], (4 * H,), jnp.float32, -s, s),
    }

    # Example token batch (trailing <pad>); lengths 5 and 7 (< T, exercises step-skip).
    x_tokens = jnp.array(
        [[1, 4, 5, 6, 2, 0, 0, 0],
         [1, 3, 4, 5, 7, 8, 2, 0]], dtype=jnp.int32)

    ref = question_lstm_encoder_ref(x_tokens, embed_w, params, NULL)

    # f32 compute path (exactly matches the reference numerics).
    out = question_lstm_encoder_pallas(x_tokens, embed_w, params, NULL)
    out = jax.block_until_ready(out)
    assert out.shape == (N, H)
    assert jnp.allclose(out, ref, atol=1e-4, rtol=1e-4), "f32 kernel mismatch vs reference"

    # bf16 matmul path (recommended on v6e/v7x; gate/cell math stays f32).
    out_bf16 = question_lstm_encoder_pallas(x_tokens, embed_w, params, NULL,
                                            compute_dtype=jnp.bfloat16)
    out_bf16 = jax.block_until_ready(out_bf16)
    assert jnp.allclose(out_bf16, ref, atol=5e-2, rtol=5e-2), "bf16 kernel mismatch vs reference"

    print("KERNEL_OK")
</pallas_src>

<mosaic_0001>
module attributes {stable_mosaic.version = 11 : i64} {
  func.func @_lstm_kernel(%arg0: memref<1xi32, #tpu.memory_space<smem>>, %arg1: memref<8x8x1xi32, #tpu.memory_space<vmem>>, %arg2: memref<8x1xi32, #tpu.memory_space<vmem>>, %arg3: memref<128x128xf32, #tpu.memory_space<vmem>>, %arg4: memref<256x512xf32, #tpu.memory_space<vmem>>, %arg5: memref<1x512xf32, #tpu.memory_space<vmem>>, %arg6: memref<256x512xf32, #tpu.memory_space<vmem>>, %arg7: memref<1x512xf32, #tpu.memory_space<vmem>>, %arg8: memref<8x128xf32, #tpu.memory_space<vmem>>) attributes {dimension_semantics = [], scalar_prefetch = 0 : i64, scratch_operands = 0 : i64, tpu.core_type = #tpu.core_type<tc>} {
    %c0 = arith.constant 0 : index
    %0 = memref.load %arg0[%c0] : memref<1xi32, #tpu.memory_space<smem>>
    %c0_0 = arith.constant 0 : index
    %c0_1 = arith.constant 0 : index
    %1 = vector.load %arg2[%c0_0, %c0_1] : memref<8x1xi32, #tpu.memory_space<vmem>>, vector<8x1xi32>
    %c0_2 = arith.constant 0 : index
    %c0_3 = arith.constant 0 : index
    %2 = vector.load %arg3[%c0_2, %c0_3] : memref<128x128xf32, #tpu.memory_space<vmem>>, vector<128x128xf32>
    %c0_4 = arith.constant 0 : index
    %c0_5 = arith.constant 0 : index
    %3 = vector.load %arg4[%c0_4, %c0_5] : memref<256x512xf32, #tpu.memory_space<vmem>>, vector<256x512xf32>
    %c0_6 = arith.constant 0 : index
    %c0_7 = arith.constant 0 : index
    %4 = vector.load %arg5[%c0_6, %c0_7] : memref<1x512xf32, #tpu.memory_space<vmem>>, vector<1x512xf32>
    %c0_8 = arith.constant 0 : index
    %c0_9 = arith.constant 0 : index
    %5 = vector.load %arg6[%c0_8, %c0_9] : memref<256x512xf32, #tpu.memory_space<vmem>>, vector<256x512xf32>
    %c0_10 = arith.constant 0 : index
    %c0_11 = arith.constant 0 : index
    %6 = vector.load %arg7[%c0_10, %c0_11] : memref<1x512xf32, #tpu.memory_space<vmem>>, vector<1x512xf32>
    %7 = tpu.iota {dimensions = array<i32: 1>} : vector<8x128xi32>
    %cst = arith.constant 0.000000e+00 : f32
    %8 = vector.broadcast %cst : f32 to vector<8x128xf32>
    %cst_12 = arith.constant 0.000000e+00 : f32
    %9 = vector.broadcast %cst_12 : f32 to vector<8x128xf32>
    %c0_i32 = arith.constant 0 : i32
    %10 = arith.subi %0, %c0_i32 : i32
    %11 = arith.addi %c0_i32, %10 : i32
    %c1_i32 = arith.constant 1 : i32
    %12:5 = scf.for %arg9 = %c0_i32 to %11 step %c1_i32 iter_args(%arg10 = %9, %arg11 = %8, %arg12 = %9, %arg13 = %8, %arg14 = %8) -> (vector<8x128xf32>, vector<8x128xf32>, vector<8x128xf32>, vector<8x128xf32>, vector<8x128xf32>)  : i32 {
      %14 = arith.index_cast %arg9 : i32 to index
      %c0_15 = arith.constant 0 : index
      %c0_16 = arith.constant 0 : index
      %15 = vector.load %arg1[%14, %c0_15, %c0_16] : memref<8x8x1xi32, #tpu.memory_space<vmem>>, vector<1x8x1xi32>
      %16 = vector.shape_cast %15 : vector<1x8x1xi32> to vector<8x1xi32>
      %17 = vector.broadcast %16 : vector<8x1xi32> to vector<8x128xi32>
      %18 = arith.cmpi eq, %7, %17 : vector<8x128xi32>
      %19 = arith.extui %18 : vector<8x128xi1> to vector<8x128xi32>
      %20 = arith.sitofp %19 : vector<8x128xi32> to vector<8x128xf32>
      %cst_17 = arith.constant dense<0.000000e+00> : vector<8x128xf32>
      %21 = tpu.matmul %20, %2, %cst_17 {dimension_numbers = #tpu.dot_dimension_numbers<[1], [0], [0], [1], [0, 0, 1, 1], [], []>} : vector<8x128xf32>, vector<128x128xf32>, vector<8x128xf32> -> vector<8x128xf32>
      %22 = tpu.concatenate %21, %arg10 in 1 : vector<8x128xf32>, vector<8x128xf32> -> vector<8x256xf32>
      %cst_18 = arith.constant dense<0.000000e+00> : vector<8x512xf32>
      %23 = tpu.matmul %22, %3, %cst_18 {dimension_numbers = #tpu.dot_dimension_numbers<[1], [0], [0], [1], [0, 0, 1, 1], [], []>} : vector<8x256xf32>, vector<256x512xf32>, vector<8x512xf32> -> vector<8x512xf32>
      %24 = vector.broadcast %4 : vector<1x512xf32> to vector<8x512xf32>
      %25 = arith.addf %23, %24 : vector<8x512xf32>
      %26 = vector.extract_strided_slice %25 {offsets = [0, 0], sizes = [8, 128], strides = [1, 1]} : vector<8x512xf32> to vector<8x128xf32>
      %27 = arith.negf %26 : vector<8x128xf32>
      %28 = math.exp %27 : vector<8x128xf32>
      %cst_19 = arith.constant 1.000000e+00 : f32
      %29 = vector.broadcast %cst_19 : f32 to vector<8x128xf32>
      %30 = arith.addf %29, %28 : vector<8x128xf32>
      %31 = arith.divf %29, %30 : vector<8x128xf32>
      %32 = vector.extract_strided_slice %25 {offsets = [0, 128], sizes = [8, 128], strides = [1, 1]} : vector<8x512xf32> to vector<8x128xf32>
      %33 = arith.negf %32 : vector<8x128xf32>
      %34 = math.exp %33 : vector<8x128xf32>
      %cst_20 = arith.constant 1.000000e+00 : f32
      %35 = vector.broadcast %cst_20 : f32 to vector<8x128xf32>
      %36 = arith.addf %35, %34 : vector<8x128xf32>
      %37 = arith.divf %35, %36 : vector<8x128xf32>
      %38 = vector.extract_strided_slice %25 {offsets = [0, 256], sizes = [8, 128], strides = [1, 1]} : vector<8x512xf32> to vector<8x128xf32>
      %39 = math.tanh %38 : vector<8x128xf32>
      %40 = vector.extract_strided_slice %25 {offsets = [0, 384], sizes = [8, 128], strides = [1, 1]} : vector<8x512xf32> to vector<8x128xf32>
      %41 = arith.negf %40 : vector<8x128xf32>
      %42 = math.exp %41 : vector<8x128xf32>
      %cst_21 = arith.constant 1.000000e+00 : f32
      %43 = vector.broadcast %cst_21 : f32 to vector<8x128xf32>
      %44 = arith.addf %43, %42 : vector<8x128xf32>
      %45 = arith.divf %43, %44 : vector<8x128xf32>
      %46 = arith.mulf %37, %arg11 : vector<8x128xf32>
      %47 = arith.mulf %31, %39 : vector<8x128xf32>
      %48 = arith.addf %46, %47 : vector<8x128xf32>
      %49 = math.tanh %48 : vector<8x128xf32>
      %50 = arith.mulf %45, %49 : vector<8x128xf32>
      %51 = tpu.concatenate %50, %arg12 in 1 : vector<8x128xf32>, vector<8x128xf32> -> vector<8x256xf32>
      %cst_22 = arith.constant dense<0.000000e+00> : vector<8x512xf32>
      %52 = tpu.matmul %51, %5, %cst_22 {dimension_numbers = #tpu.dot_dimension_numbers<[1], [0], [0], [1], [0, 0, 1, 1], [], []>} : vector<8x256xf32>, vector<256x512xf32>, vector<8x512xf32> -> vector<8x512xf32>
      %53 = vector.broadcast %6 : vector<1x512xf32> to vector<8x512xf32>
      %54 = arith.addf %52, %53 : vector<8x512xf32>
      %55 = vector.extract_strided_slice %54 {offsets = [0, 0], sizes = [8, 128], strides = [1, 1]} : vector<8x512xf32> to vector<8x128xf32>
      %56 = arith.negf %55 : vector<8x128xf32>
      %57 = math.exp %56 : vector<8x128xf32>
      %cst_23 = arith.constant 1.000000e+00 : f32
      %58 = vector.broadcast %cst_23 : f32 to vector<8x128xf32>
      %59 = arith.addf %58, %57 : vector<8x128xf32>
      %60 = arith.divf %58, %59 : vector<8x128xf32>
      %61 = vector.extract_strided_slice %54 {offsets = [0, 128], sizes = [8, 128], strides = [1, 1]} : vector<8x512xf32> to vector<8x128xf32>
      %62 = arith.negf %61 : vector<8x128xf32>
      %63 = math.exp %62 : vector<8x128xf32>
      %cst_24 = arith.constant 1.000000e+00 : f32
      %64 = vector.broadcast %cst_24 : f32 to vector<8x128xf32>
      %65 = arith.addf %64, %63 : vector<8x128xf32>
      %66 = arith.divf %64, %65 : vector<8x128xf32>
      %67 = vector.extract_strided_slice %54 {offsets = [0, 256], sizes = [8, 128], strides = [1, 1]} : vector<8x512xf32> to vector<8x128xf32>
      %68 = math.tanh %67 : vector<8x128xf32>
      %69 = vector.extract_strided_slice %54 {offsets = [0, 384], sizes = [8, 128], strides = [1, 1]} : vector<8x512xf32> to vector<8x128xf32>
      %70 = arith.negf %69 : vector<8x128xf32>
      %71 = math.exp %70 : vector<8x128xf32>
      %cst_25 = arith.constant 1.000000e+00 : f32
      %72 = vector.broadcast %cst_25 : f32 to vector<8x128xf32>
      %73 = arith.addf %72, %71 : vector<8x128xf32>
      %74 = arith.divf %72, %73 : vector<8x128xf32>
      %75 = arith.mulf %66, %arg13 : vector<8x128xf32>
      %76 = arith.mulf %60, %68 : vector<8x128xf32>
      %77 = arith.addf %75, %76 : vector<8x128xf32>
      %78 = math.tanh %77 : vector<8x128xf32>
      %79 = arith.mulf %74, %78 : vector<8x128xf32>
      %80 = vector.broadcast %arg9 : i32 to vector<8x1xi32>
      %81 = arith.cmpi eq, %1, %80 : vector<8x1xi32>
      %82 = vector.shape_cast %81 : vector<8x1xi1> to vector<8x1xi1>
      %83 = vector.broadcast %82 : vector<8x1xi1> to vector<8x128xi1>
      %84 = arith.select %83, %79, %arg14 : vector<8x128xi1>, vector<8x128xf32>
      scf.yield %50, %48, %79, %77, %84 : vector<8x128xf32>, vector<8x128xf32>, vector<8x128xf32>, vector<8x128xf32>, vector<8x128xf32>
    }
    %c0_13 = arith.constant 0 : index
    %c0_14 = arith.constant 0 : index
    %13 = vector.load %arg8[%c0_13, %c0_14] : memref<8x128xf32, #tpu.memory_space<vmem>>, vector<8x128xf32>
    tpu.vector_store %arg8[%c0_13, %c0_14], %12#4 {strides = array<i32>} : memref<8x128xf32, #tpu.memory_space<vmem>>, vector<8x128xf32>,
    return
  }
}

</mosaic_0001>

<bundles_post_ra>
// kernel: tpu_custom_call.1
= control target key start
LH: loop header
LB: loop body
LE: loop exit
PB: predicated region body
PF: predicated region fallthrough
CT: control target
= control target key end

     0   :  { %14 = vsyncpa [#allocation4], 0  ;;  %s2163_s0 = inlined_call_operand.<no memory space> [shape: s32[1], index: 0, kind: input, shape index: {}]   ;;  %s2164_s1 = inlined_call_operand.vmem [shape: s32[8,8,1], index: 1, kind: input, shape index: {}]   ;;  %s2165_s2 = inlined_call_operand.vmem [shape: s32[8,1], index: 2, kind: input, shape index: {}]   ;;  %s2166_s3 = inlined_call_operand.hbm [shape: f32[128,128], index: 3, kind: input, shape index: {}]   ;;  %s2167_s4 = inlined_call_operand.hbm [shape: f32[256,512], index: 4, kind: input, shape index: {}]   ;;  %s2168_s5 = inlined_call_operand.vmem [shape: f32[1,512], index: 5, kind: input, shape index: {}]   ;;  %s2169_s6 = inlined_call_operand.hbm [shape: f32[256,512], index: 6, kind: input, shape index: {}]   ;;  %s2170_s7 = inlined_call_operand.vmem [shape: f32[1,512], index: 7, kind: input, shape index: {}]   ;;  %s2171_s8 = inlined_call_operand.hbm [shape: f32[8,128], index: 8, kind: output, shape index: {}]  }
   0x1   :  { %15 = vsyncpa [#allocation7], 0 }
   0x2   :  { %16 = vsyncpa [#allocation5], 0  ;;  %s1166_s27 = smov [#allocation6]  }
   0x3   :  { %s40_s28 = sshll.u32 %s1166_s27, 4  ;;  %s41_s28 = int_to_ptr.vmem [resolvable:$true] %s40_s28 }
   0x4   :  { %s1032_s29 = scalar_lea.vmem %s41_s28, 16384  ;;  %p1037_p1 = scmp.lt.s32.totalorder %s41_s28, %s41_s28 }
   0x5   :  { %p1033_p0 = scmp.ne.s32.totalorder %s41_s28, %s1032_s29  ;;  %p1038_p2 = scmp.lt.s32.totalorder %s1032_s29, %s1032_s29 }
   0x7   :  { %p1039_p3 = por %p1038_p2, %p1037_p1 }
   0x9   :  { %p1040_p4 = pnand %p1039_p3, %p1033_p0 }
   0xb   :  { %1043 = shalt.err (!%p1040_p4)
}
   0xc   :  { %s1167_s30 = smov 512   ;;  %s1168_s9 = smov 32  }
   0xd   :  { %46 = dma.hbm_to_vmem [thread:$0]  %s2167_s4, 16384, %s41_s28, [#allocation7], %s1167_s30, %s1167_s30, %s1168_s9  }
   0xe   :  { %s1169_s12 = smov [#allocation3]  }
   0xf   :  { %s28_s13 = sshll.u32 %s1169_s12, 4  ;;  %s29_s13 = int_to_ptr.vmem [resolvable:$true] %s28_s13 }
  0x10   :  { %s1052_s14 = scalar_lea.vmem %s29_s13, 2048  ;;  %p1057_p6 = scmp.lt.s32.totalorder %s29_s13, %s29_s13 }
  0x11   :  { %p1053_p5 = scmp.ne.s32.totalorder %s29_s13, %s1052_s14  ;;  %p1058_p7 = scmp.lt.s32.totalorder %s1052_s14, %s1052_s14 }
  0x13   :  { %p1059_p8 = por %p1058_p7, %p1057_p6 }
  0x15   :  { %p1060_p9 = pnand %p1059_p8, %p1053_p5 }
  0x17   :  { %1063 = shalt.err (!%p1060_p9)
}
  0x18   :  { %s1170_s15 = smov 128   ;;  %s1171_s16 = smov 8  }
  0x19   :  { %34 = dma.hbm_to_vmem [thread:$0]  %s2166_s3, 2048, %s29_s13, [#allocation4], %s1170_s15, %s1170_s15, %s1171_s16  }
  0x1a   :  { %s1172_s19 = smov [#allocation8]  }
  0x1b   :  { %s54_s20 = sshll.u32 %s1172_s19, 4  ;;  %s55_s20 = int_to_ptr.vmem [resolvable:$true] %s54_s20 }
  0x1c   :  { %s1072_s4 = scalar_lea.vmem %s55_s20, 16384  ;;  %p1077_p11 = scmp.lt.s32.totalorder %s55_s20, %s55_s20 }
  0x1d   :  { %p1073_p10 = scmp.ne.s32.totalorder %s55_s20, %s1072_s4  ;;  %p1078_p12 = scmp.lt.s32.totalorder %s1072_s4, %s1072_s4 }
  0x1f   :  { %p1079_p13 = por %p1078_p12, %p1077_p11 }
  0x21   :  { %p1080_p0 = pnand %p1079_p13, %p1073_p10 }
  0x23   :  { %1083 = shalt.err (!%p1080_p0)
}
  0x24   :  { %60 = dma.hbm_to_vmem [thread:$0]  %s2169_s6, 16384, %s55_s20, [#allocation7], %s1167_s30, %s1167_s30, %s1168_s9  }
  0x25   :  { %1132 = dma.done.wait [#allocation4], 2048  }
  0x26   :  { %1133 = vsyncadd [#allocation4], 4294965248 }
  0x27   :  { %1134 = dma.done.wait [#allocation7], 32768  }
  0x28   :  { %1135 = vsyncadd [#allocation7], 4294934528  ;;  %v2172_v0 = vlaneseq  ;;  %v1238_v2 = vld [vmem:[%s2165_s2] sm:$0xff]  ;;  %v1242_v4 = vld [vmem:[#allocation3 + $0x8] sm:$0xff]  ;;  %p861_p1 = scmp.le.s32.totalorder %s2163_s0, 0 }
  0x29   :  { %2175 = vst [vmem:[#allocation14_spill] sm:$0xff] %v1238_v2  ;;  %v1240_v3 = vld [vmem:[#allocation3] sm:$0xff]  ;;  %2177 = vst [vmem:[#allocation16_spill] sm:$0xff] %v1242_v4  ;;  %v1244_v5 = vld [vmem:[#allocation3 + $0x10] sm:$0xff]  ;;  %s1809_s27 = smov (!%p861_p1), 0  }
  0x2a   :  { %v1233_v1 = vand.u32 127, %v2172_v0  ;;  %2176 = vst [vmem:[#allocation15_spill] sm:$0xff] %v1240_v3  ;;  %2178 = vst [vmem:[#allocation17_spill] sm:$0xff] %v1244_v5  ;;  %v1246_v6 = vld [vmem:[#allocation3 + $0x18] sm:$0xff]  ;;  %v1248_v7 = vld [vmem:[#allocation3 + $0x20] sm:$0xff] }
  0x2b   :  { %2179 = vst [vmem:[#allocation18_spill] sm:$0xff] %v1246_v6  ;;  %2180 = vst [vmem:[#allocation19_spill] sm:$0xff] %v1248_v7  ;;  %v1250_v8 = vld [vmem:[#allocation3 + $0x28] sm:$0xff]  ;;  %v1252_v9 = vld [vmem:[#allocation3 + $0x30] sm:$0xff] }
  0x2c   :  { %2174 = vst [vmem:[#allocation13_spill] sm:$0xff] %v1233_v1  ;;  %2181 = vst [vmem:[#allocation20_spill] sm:$0xff] %v1250_v8  ;;  %v1254_v10 = vld [vmem:[#allocation3 + $0x38] sm:$0xff]  ;;  %v1256_v11 = vld [vmem:[#allocation3 + $0x40] sm:$0xff] }
  0x2d   :  { %2182 = vst [vmem:[#allocation21_spill] sm:$0xff] %v1252_v9  ;;  %2183 = vst [vmem:[#allocation22_spill] sm:$0xff] %v1254_v10  ;;  %v1258_v12 = vld [vmem:[#allocation3 + $0x48] sm:$0xff]  ;;  %v1260_v13 = vld [vmem:[#allocation3 + $0x50] sm:$0xff] }
  0x2e   :  { %2184 = vst [vmem:[#allocation23_spill] sm:$0xff] %v1256_v11  ;;  %2185 = vst [vmem:[#allocation24_spill] sm:$0xff] %v1258_v12  ;;  %v1262_v14 = vld [vmem:[#allocation3 + $0x58] sm:$0xff]  ;;  %v1264_v15 = vld [vmem:[#allocation3 + $0x60] sm:$0xff] }
  0x2f   :  { %2186 = vst [vmem:[#allocation25_spill] sm:$0xff] %v1260_v13  ;;  %2187 = vst [vmem:[#allocation26_spill] sm:$0xff] %v1262_v14  ;;  %v1266_v16 = vld [vmem:[#allocation3 + $0x68] sm:$0xff]  ;;  %v1268_v17 = vld [vmem:[#allocation3 + $0x70] sm:$0xff] }
  0x30   :  { %2188 = vst [vmem:[#allocation27_spill] sm:$0xff] %v1264_v15  ;;  %2189 = vst [vmem:[#allocation28_spill] sm:$0xff] %v1266_v16  ;;  %v1270_v18 = vld [vmem:[#allocation3 + $0x78] sm:$0xff]  ;;  %v1272_v19 = vld [vmem:[#allocation6] sm:$0xff] }
  0x31   :  { %2190 = vst [vmem:[#allocation29_spill] sm:$0xff] %v1270_v18  ;;  %v1274_v20 = vld [vmem:[#allocation6 + $0x8] sm:$0xff]  ;;  %v1276_v21 = vld [vmem:[#allocation6 + $0x10] sm:$0xff]  ;;  %v1278_v22 = vld [vmem:[#allocation6 + $0x18] sm:$0xff] }
  0x32   :  { %2191 = vst [vmem:[#allocation30_spill] sm:$0xff] %v1276_v21  ;;  %2192 = vst [vmem:[#allocation31_spill] sm:$0xff] %v1278_v22  ;;  %v1280_v23 = vld [vmem:[#allocation6 + $0x20] sm:$0xff]  ;;  %v1282_v24 = vld [vmem:[#allocation6 + $0x28] sm:$0xff] }
  0x33   :  { %v1284_v25 = vld [vmem:[#allocation6 + $0x30] sm:$0xff]  ;;  %v1286_v26 = vld [vmem:[#allocation6 + $0x38] sm:$0xff]  ;;  %v1288_v27 = vld [vmem:[#allocation6 + $0x40] sm:$0xff] }
  0x34   :  { %2193 = vst [vmem:[#allocation32_spill] sm:$0xff] %v1284_v25  ;;  %2194 = vst [vmem:[#allocation33_spill] sm:$0xff] %v1286_v26  ;;  %v1290_v28 = vld [vmem:[#allocation6 + $0x48] sm:$0xff]  ;;  %v1292_v29 = vld [vmem:[#allocation6 + $0x50] sm:$0xff] }
  0x35   :  { %2195 = vst [vmem:[#allocation34_spill] sm:$0xff] %v1292_v29  ;;  %v1294_v30 = vld [vmem:[#allocation6 + $0x58] sm:$0xff]  ;;  %v1296_v31 = vld [vmem:[#allocation6 + $0x60] sm:$0xff]  ;;  %v1298_v32 = vld [vmem:[#allocation6 + $0x68] sm:$0xff] }
  0x36   :  { %2196 = vst [vmem:[#allocation35_spill] sm:$0xff] %v1294_v30  ;;  %v1300_v33 = vld [vmem:[#allocation6 + $0x70] sm:$0xff]  ;;  %v1302_v34 = vld [vmem:[#allocation6 + $0x78] sm:$0xff]  ;;  %v1304_v35 = vld [vmem:[#allocation6 + $0x80] sm:$0xff] }
  0x37   :  { %2197 = vst [vmem:[#allocation36_spill] sm:$0xff] %v1300_v33  ;;  %2198 = vst [vmem:[#allocation37_spill] sm:$0xff] %v1302_v34  ;;  %v1306_v36 = vld [vmem:[#allocation6 + $0x88] sm:$0xff]  ;;  %v1308_v37 = vld [vmem:[#allocation6 + $0x90] sm:$0xff] }
  0x38   :  { %2199 = vst [vmem:[#allocation38_spill] sm:$0xff] %v1308_v37  ;;  %v1310_v38 = vld [vmem:[#allocation6 + $0x98] sm:$0xff]  ;;  %v1312_v39 = vld [vmem:[#allocation6 + $0xa0] sm:$0xff]  ;;  %v1314_v40 = vld [vmem:[#allocation6 + $0xa8] sm:$0xff] }
  0x39   :  { %2200 = vst [vmem:[#allocation39_spill] sm:$0xff] %v1310_v38  ;;  %v1316_v41 = vld [vmem:[#allocation6 + $0xb0] sm:$0xff]  ;;  %v1318_v42 = vld [vmem:[#allocation6 + $0xb8] sm:$0xff]  ;;  %v1320_v43 = vld [vmem:[#allocation6 + $0xc0] sm:$0xff] }
  0x3a   :  { %2201 = vst [vmem:[#allocation40_spill] sm:$0xff] %v1316_v41  ;;  %2202 = vst [vmem:[#allocation41_spill] sm:$0xff] %v1318_v42  ;;  %v1322_v44 = vld [vmem:[#allocation6 + $0xc8] sm:$0xff]  ;;  %v1324_v45 = vld [vmem:[#allocation6 + $0xd0] sm:$0xff] }
  0x3b   :  { %2203 = vst [vmem:[#allocation42_spill] sm:$0xff] %v1324_v45  ;;  %v1326_v46 = vld [vmem:[#allocation6 + $0xd8] sm:$0xff]  ;;  %v1328_v47 = vld [vmem:[#allocation6 + $0xe0] sm:$0xff]  ;;  %v1330_v48 = vld [vmem:[#allocation6 + $0xe8] sm:$0xff] }
  0x3c   :  { %2204 = vst [vmem:[#allocation43_spill] sm:$0xff] %v1326_v46  ;;  %v1332_v49 = vld [vmem:[#allocation6 + $0xf0] sm:$0xff]  ;;  %v1334_v50 = vld [vmem:[#allocation6 + $0xf8] sm:$0xff]  ;;  %v1336_v51 = vld [vmem:[#allocation6 + $0x100] sm:$0xff] }
  0x3d   :  { %2205 = vst [vmem:[#allocation44_spill] sm:$0xff] %v1332_v49  ;;  %2206 = vst [vmem:[#allocation45_spill] sm:$0xff] %v1334_v50  ;;  %v1338_v52 = vld [vmem:[#allocation6 + $0x108] sm:$0xff]  ;;  %v1340_v53 = vld [vmem:[#allocation6 + $0x110] sm:$0xff] }
  0x3e   :  { %2207 = vst [vmem:[#allocation46_spill] sm:$0xff] %v1340_v53  ;;  %v1342_v54 = vld [vmem:[#allocation6 + $0x118] sm:$0xff]  ;;  %v1344_v55 = vld [vmem:[#allocation6 + $0x120] sm:$0xff]  ;;  %v1346_v56 = vld [vmem:[#allocation6 + $0x128] sm:$0xff] }
  0x3f   :  { %2208 = vst [vmem:[#allocation47_spill] sm:$0xff] %v1342_v54  ;;  %v1348_v57 = vld [vmem:[#allocation6 + $0x130] sm:$0xff]  ;;  %v1350_v58 = vld [vmem:[#allocation6 + $0x138] sm:$0xff]  ;;  %v1352_v59 = vld [vmem:[#allocation6 + $0x140] sm:$0xff] }
  0x40   :  { %2209 = vst [vmem:[#allocation48_spill] sm:$0xff] %v1348_v57  ;;  %2210 = vst [vmem:[#allocation49_spill] sm:$0xff] %v1350_v58  ;;  %v1354_v60 = vld [vmem:[#allocation6 + $0x148] sm:$0xff]  ;;  %v1356_v61 = vld [vmem:[#allocation6 + $0x150] sm:$0xff] }
  0x41   :  { %2211 = vst [vmem:[#allocation50_spill] sm:$0xff] %v1356_v61  ;;  %v1358_v62 = vld [vmem:[#allocation6 + $0x158] sm:$0xff]  ;;  %v1360_v63 = vld [vmem:[#allocation6 + $0x160] sm:$0xff]  ;;  %v1362_v0 = vld [vmem:[#allocation6 + $0x168] sm:$0xff] }
  0x42   :  { %2212 = vst [vmem:[#allocation51_spill] sm:$0xff] %v1358_v62  ;;  %2213 = vst [vmem:[#allocation52_spill] sm:$0xff] %v1362_v0  ;;  %v1364_v21 = vld [vmem:[#allocation6 + $0x170] sm:$0xff]  ;;  %v1366_v22 = vld [vmem:[#allocation6 + $0x178] sm:$0xff] }
  0x43   :  { %2214 = vst [vmem:[#allocation53_spill] sm:$0xff] %v1364_v21  ;;  %2215 = vst [vmem:[#allocation54_spill] sm:$0xff] %v1366_v22  ;;  %v1368_v25 = vld [vmem:[#allocation6 + $0x180] sm:$0xff]  ;;  %v1370_v26 = vld [vmem:[#allocation6 + $0x188] sm:$0xff] }
  0x44   :  { %v1372_v29 = vld [vmem:[#allocation6 + $0x190] sm:$0xff]  ;;  %v1374_v30 = vld [vmem:[#allocation6 + $0x198] sm:$0xff]  ;;  %v1376_v33 = vld [vmem:[#allocation6 + $0x1a0] sm:$0xff] }
  0x45   :  { %2216 = vst [vmem:[#allocation55_spill] sm:$0xff] %v1372_v29  ;;  %2217 = vst [vmem:[#allocation56_spill] sm:$0xff] %v1374_v30  ;;  %v1378_v34 = vld [vmem:[#allocation6 + $0x1a8] sm:$0xff]  ;;  %v1380_v37 = vld [vmem:[#allocation6 + $0x1b0] sm:$0xff] }
  0x46   :  { %2218 = vst [vmem:[#allocation57_spill] sm:$0xff] %v1380_v37  ;;  %v1382_v38 = vld [vmem:[#allocation6 + $0x1b8] sm:$0xff]  ;;  %v1384_v41 = vld [vmem:[#allocation6 + $0x1c0] sm:$0xff]  ;;  %v1386_v42 = vld [vmem:[#allocation6 + $0x1c8] sm:$0xff] }
  0x47   :  { %2219 = vst [vmem:[#allocation58_spill] sm:$0xff] %v1382_v38  ;;  %v1388_v45 = vld [vmem:[#allocation6 + $0x1d0] sm:$0xff]  ;;  %v1390_v46 = vld [vmem:[#allocation6 + $0x1d8] sm:$0xff]  ;;  %v1392_v49 = vld [vmem:[#allocation6 + $0x1e0] sm:$0xff] }
  0x48   :  { %2220 = vst [vmem:[#allocation59_spill] sm:$0xff] %v1388_v45  ;;  %2221 = vst [vmem:[#allocation60_spill] sm:$0xff] %v1390_v46  ;;  %v1394_v50 = vld [vmem:[#allocation6 + $0x1e8] sm:$0xff]  ;;  %v1396_v53 = vld [vmem:[#allocation6 + $0x1f0] sm:$0xff] }
  0x49   :  { %2222 = vst [vmem:[#allocation61_spill] sm:$0xff] %v1394_v50  ;;  %2223 = vst [vmem:[#allocation62_spill] sm:$0xff] %v1396_v53  ;;  %v1398_v54 = vld [vmem:[#allocation6 + $0x1f8] sm:$0xff]  ;;  %v1400_v57 = vld [vmem:[#allocation6 + $0x200] sm:$0xff] }
  0x4a   :  { %2224 = vst [vmem:[#allocation63_spill] sm:$0xff] %v1400_v57  ;;  %v1402_v58 = vld [vmem:[#allocation6 + $0x208] sm:$0xff]  ;;  %v1404_v61 = vld [vmem:[#allocation6 + $0x210] sm:$0xff]  ;;  %v1406_v62 = vld [vmem:[#allocation6 + $0x218] sm:$0xff] }
  0x4b   :  { %2225 = vst [vmem:[#allocation64_spill] sm:$0xff] %v1402_v58  ;;  %2226 = vst [vmem:[#allocation65_spill] sm:$0xff] %v1404_v61  ;;  %v1408_v21 = vld [vmem:[#allocation6 + $0x220] sm:$0xff]  ;;  %v1410_v22 = vld [vmem:[#allocation6 + $0x228] sm:$0xff] }
  0x4c   :  { %2227 = vst [vmem:[#allocation66_spill] sm:$0xff] %v1406_v62  ;;  %2228 = vst [vmem:[#allocation67_spill] sm:$0xff] %v1408_v21  ;;  %v1412_v29 = vld [vmem:[#allocation6 + $0x230] sm:$0xff]  ;;  %v1414_v30 = vld [vmem:[#allocation6 + $0x238] sm:$0xff] }
  0x4d   :  { %2229 = vst [vmem:[#allocation68_spill] sm:$0xff] %v1410_v22  ;;  %2230 = vst [vmem:[#allocation69_spill] sm:$0xff] %v1412_v29  ;;  %v1416_v37 = vld [vmem:[#allocation6 + $0x240] sm:$0xff]  ;;  %v1418_v38 = vld [vmem:[#allocation6 + $0x248] sm:$0xff] }
  0x4e   :  { %2231 = vst [vmem:[#allocation70_spill] sm:$0xff] %v1414_v30  ;;  %2232 = vst [vmem:[#allocation71_spill] sm:$0xff] %v1416_v37  ;;  %v1420_v45 = vld [vmem:[#allocation6 + $0x250] sm:$0xff]  ;;  %v1422_v46 = vld [vmem:[#allocation6 + $0x258] sm:$0xff] }
  0x4f   :  { %2233 = vst [vmem:[#allocation72_spill] sm:$0xff] %v1418_v38  ;;  %2234 = vst [vmem:[#allocation73_spill] sm:$0xff] %v1420_v45  ;;  %v1424_v53 = vld [vmem:[#allocation6 + $0x260] sm:$0xff]  ;;  %v1426_v61 = vld [vmem:[#allocation6 + $0x268] sm:$0xff] }
  0x50   :  { %2235 = vst [vmem:[#allocation74_spill] sm:$0xff] %v1422_v46  ;;  %2236 = vst [vmem:[#allocation75_spill] sm:$0xff] %v1424_v53  ;;  %v1428_v62 = vld [vmem:[#allocation6 + $0x270] sm:$0xff]  ;;  %v1430_v1 = vld [vmem:[#allocation6 + $0x278] sm:$0xff] }
  0x51   :  { %2237 = vst [vmem:[#allocation76_spill] sm:$0xff] %v1426_v61  ;;  %2238 = vst [vmem:[#allocation77_spill] sm:$0xff] %v1428_v62  ;;  %v1432_v57 = vld [vmem:[#allocation6 + $0x280] sm:$0xff]  ;;  %v1434_v29 = vld [vmem:[#allocation6 + $0x288] sm:$0xff] }
  0x52   :  { %2239 = vst [vmem:[#allocation78_spill] sm:$0xff] %v1430_v1  ;;  %2240 = vst [vmem:[#allocation79_spill] sm:$0xff] %v1432_v57  ;;  %v1436_v30 = vld [vmem:[#allocation6 + $0x290] sm:$0xff]  ;;  %v1438_v58 = vld [vmem:[#allocation6 + $0x298] sm:$0xff] }
  0x53   :  { %2241 = vst [vmem:[#allocation80_spill] sm:$0xff] %v1434_v29  ;;  %2242 = vst [vmem:[#allocation81_spill] sm:$0xff] %v1436_v30  ;;  %v1440_v21 = vld [vmem:[#allocation6 + $0x2a0] sm:$0xff]  ;;  %v1442_v45 = vld [vmem:[#allocation6 + $0x2a8] sm:$0xff] }
  0x54   :  { %2243 = vst [vmem:[#allocation82_spill] sm:$0xff] %v1438_v58  ;;  %2244 = vst [vmem:[#allocation83_spill] sm:$0xff] %v1440_v21  ;;  %v1444_v46 = vld [vmem:[#allocation6 + $0x2b0] sm:$0xff]  ;;  %v1446_v22 = vld [vmem:[#allocation6 + $0x2b8] sm:$0xff] }
  0x55   :  { %2245 = vst [vmem:[#allocation84_spill] sm:$0xff] %v1442_v45  ;;  %2246 = vst [vmem:[#allocation85_spill] sm:$0xff] %v1444_v46  ;;  %v1448_v37 = vld [vmem:[#allocation6 + $0x2c0] sm:$0xff]  ;;  %v1450_v62 = vld [vmem:[#allocation6 + $0x2c8] sm:$0xff] }
  0x56   :  { %2247 = vst [vmem:[#allocation86_spill] sm:$0xff] %v1446_v22  ;;  %2248 = vst [vmem:[#allocation87_spill] sm:$0xff] %v1448_v37  ;;  %v1452_v1 = vld [vmem:[#allocation6 + $0x2d0] sm:$0xff]  ;;  %v1454_v38 = vld [vmem:[#allocation6 + $0x2d8] sm:$0xff] }
  0x57   :  { %2249 = vst [vmem:[#allocation88_spill] sm:$0xff] %v1450_v62  ;;  %2250 = vst [vmem:[#allocation89_spill] sm:$0xff] %v1452_v1  ;;  %v1456_v53 = vld [vmem:[#allocation6 + $0x2e0] sm:$0xff]  ;;  %v1458_v30 = vld [vmem:[#allocation6 + $0x2e8] sm:$0xff] }
  0x58   :  { %2251 = vst [vmem:[#allocation90_spill] sm:$0xff] %v1454_v38  ;;  %2252 = vst [vmem:[#allocation91_spill] sm:$0xff] %v1456_v53  ;;  %v1460_v58 = vld [vmem:[#allocation6 + $0x2f0] sm:$0xff]  ;;  %v1462_v61 = vld [vmem:[#allocation6 + $0x2f8] sm:$0xff] }
  0x59   :  { %2253 = vst [vmem:[#allocation92_spill] sm:$0xff] %v1458_v30  ;;  %2254 = vst [vmem:[#allocation93_spill] sm:$0xff] %v1460_v58  ;;  %v1464_v57 = vld [vmem:[#allocation6 + $0x300] sm:$0xff]  ;;  %v1466_v46 = vld [vmem:[#allocation6 + $0x308] sm:$0xff] }
  0x5a   :  { %2255 = vst [vmem:[#allocation94_spill] sm:$0xff] %v1462_v61  ;;  %2256 = vst [vmem:[#allocation95_spill] sm:$0xff] %v1464_v57  ;;  %v1468_v22 = vld [vmem:[#allocation6 + $0x310] sm:$0xff]  ;;  %v1470_v29 = vld [vmem:[#allocation6 + $0x318] sm:$0xff] }
  0x5b   :  { %2257 = vst [vmem:[#allocation96_spill] sm:$0xff] %v1466_v46  ;;  %2258 = vst [vmem:[#allocation97_spill] sm:$0xff] %v1468_v22  ;;  %v1472_v21 = vld [vmem:[#allocation6 + $0x320] sm:$0xff]  ;;  %v1474_v1 = vld [vmem:[#allocation6 + $0x328] sm:$0xff] }
  0x5c   :  { %2259 = vst [vmem:[#allocation98_spill] sm:$0xff] %v1470_v29  ;;  %2260 = vst [vmem:[#allocation99_spill] sm:$0xff] %v1472_v21  ;;  %v1476_v38 = vld [vmem:[#allocation6 + $0x330] sm:$0xff]  ;;  %v1478_v45 = vld [vmem:[#allocation6 + $0x338] sm:$0xff] }
  0x5d   :  { %2261 = vst [vmem:[#allocation100_spill] sm:$0xff] %v1474_v1  ;;  %2262 = vst [vmem:[#allocation101_spill] sm:$0xff] %v1476_v38  ;;  %v1480_v37 = vld [vmem:[#allocation6 + $0x340] sm:$0xff]  ;;  %v1482_v58 = vld [vmem:[#allocation6 + $0x348] sm:$0xff] }
  0x5e   :  { %2263 = vst [vmem:[#allocation102_spill] sm:$0xff] %v1478_v45  ;;  %2264 = vst [vmem:[#allocation103_spill] sm:$0xff] %v1480_v37  ;;  %v1484_v61 = vld [vmem:[#allocation6 + $0x350] sm:$0xff]  ;;  %v1486_v62 = vld [vmem:[#allocation6 + $0x358] sm:$0xff] }
  0x5f   :  { %2265 = vst [vmem:[#allocation104_spill] sm:$0xff] %v1482_v58  ;;  %2266 = vst [vmem:[#allocation105_spill] sm:$0xff] %v1484_v61  ;;  %v1488_v53 = vld [vmem:[#allocation6 + $0x360] sm:$0xff]  ;;  %v1490_v22 = vld [vmem:[#allocation6 + $0x368] sm:$0xff] }
  0x60   :  { %2267 = vst [vmem:[#allocation106_spill] sm:$0xff] %v1486_v62  ;;  %2268 = vst [vmem:[#allocation107_spill] sm:$0xff] %v1488_v53  ;;  %v1492_v29 = vld [vmem:[#allocation6 + $0x370] sm:$0xff]  ;;  %v1494_v30 = vld [vmem:[#allocation6 + $0x378] sm:$0xff] }
  0x61   :  { %2269 = vst [vmem:[#allocation108_spill] sm:$0xff] %v1490_v22  ;;  %2270 = vst [vmem:[#allocation109_spill] sm:$0xff] %v1492_v29  ;;  %v1496_v57 = vld [vmem:[#allocation6 + $0x380] sm:$0xff]  ;;  %v1498_v38 = vld [vmem:[#allocation6 + $0x388] sm:$0xff] }
  0x62   :  { %2271 = vst [vmem:[#allocation110_spill] sm:$0xff] %v1494_v30  ;;  %2272 = vst [vmem:[#allocation111_spill] sm:$0xff] %v1496_v57  ;;  %v1500_v45 = vld [vmem:[#allocation6 + $0x390] sm:$0xff]  ;;  %v1502_v46 = vld [vmem:[#allocation6 + $0x398] sm:$0xff] }
  0x63   :  { %2273 = vst [vmem:[#allocation112_spill] sm:$0xff] %v1498_v38  ;;  %2274 = vst [vmem:[#allocation113_spill] sm:$0xff] %v1500_v45  ;;  %v1504_v21 = vld [vmem:[#allocation6 + $0x3a0] sm:$0xff]  ;;  %v1506_v61 = vld [vmem:[#allocation6 + $0x3a8] sm:$0xff] }
  0x64   :  { %2275 = vst [vmem:[#allocation114_spill] sm:$0xff] %v1502_v46  ;;  %2276 = vst [vmem:[#allocation115_spill] sm:$0xff] %v1504_v21  ;;  %v1508_v62 = vld [vmem:[#allocation6 + $0x3b0] sm:$0xff]  ;;  %v1510_v1 = vld [vmem:[#allocation6 + $0x3b8] sm:$0xff] }
  0x65   :  { %2277 = vst [vmem:[#allocation116_spill] sm:$0xff] %v1506_v61  ;;  %2278 = vst [vmem:[#allocation117_spill] sm:$0xff] %v1508_v62  ;;  %v1512_v37 = vld [vmem:[#allocation6 + $0x3c0] sm:$0xff]  ;;  %v1514_v29 = vld [vmem:[#allocation6 + $0x3c8] sm:$0xff] }
  0x66   :  { %2279 = vst [vmem:[#allocation118_spill] sm:$0xff] %v1510_v1  ;;  %2280 = vst [vmem:[#allocation119_spill] sm:$0xff] %v1512_v37  ;;  %v1516_v30 = vld [vmem:[#allocation6 + $0x3d0] sm:$0xff]  ;;  %v1518_v58 = vld [vmem:[#allocation6 + $0x3d8] sm:$0xff] }
  0x67   :  { %2281 = vst [vmem:[#allocation120_spill] sm:$0xff] %v1516_v30  ;;  %2282 = vst [vmem:[#allocation121_spill] sm:$0xff] %v1518_v58  ;;  %v1520_v53 = vld [vmem:[#allocation6 + $0x3e0] sm:$0xff]  ;;  %v1522_v45 = vld [vmem:[#allocation6 + $0x3e8] sm:$0xff] }
  0x68   :  { %v1524_v46 = vld [vmem:[#allocation6 + $0x3f0] sm:$0xff]  ;;  %v1526_v22 = vld [vmem:[#allocation6 + $0x3f8] sm:$0xff]  ;;  %v1531_v62 = vld [vmem:[%s2168_s5] sm:$0xf] }
  0x69   :  { %2283 = vst [vmem:[#allocation122_spill] sm:$0xff] %v1524_v46  ;;  %2284 = vst [vmem:[#allocation123_spill] sm:$0xff] %v1526_v22  ;;  %v1533_v1 = vld [vmem:[#allocation8] sm:$0xff]  ;;  %v1535_v57 = vld [vmem:[#allocation8 + $0x8] sm:$0xff] }
  0x6a   :  { %2285 = vst [vmem:[#allocation124_spill] sm:$0xff] %v1531_v62  ;;  %2286 = vst [vmem:[#allocation125_spill] sm:$0xff] %v1533_v1  ;;  %v1537_v30 = vld [vmem:[#allocation8 + $0x10] sm:$0xff]  ;;  %v1539_v58 = vld [vmem:[#allocation8 + $0x18] sm:$0xff] }
  0x6b   :  { %2287 = vst [vmem:[#allocation126_spill] sm:$0xff] %v1535_v57  ;;  %2288 = vst [vmem:[#allocation127_spill] sm:$0xff] %v1537_v30  ;;  %v1541_v38 = vld [vmem:[#allocation8 + $0x20] sm:$0xff]  ;;  %v1543_v21 = vld [vmem:[#allocation8 + $0x28] sm:$0xff] }
  0x6c   :  { %2289 = vst [vmem:[#allocation128_spill] sm:$0xff] %v1539_v58  ;;  %2290 = vst [vmem:[#allocation129_spill] sm:$0xff] %v1541_v38  ;;  %v1545_v46 = vld [vmem:[#allocation8 + $0x30] sm:$0xff]  ;;  %v1547_v22 = vld [vmem:[#allocation8 + $0x38] sm:$0xff] }
  0x6d   :  { %2291 = vst [vmem:[#allocation130_spill] sm:$0xff] %v1543_v21  ;;  %2292 = vst [vmem:[#allocation131_spill] sm:$0xff] %v1545_v46  ;;  %v1549_v61 = vld [vmem:[#allocation8 + $0x40] sm:$0xff]  ;;  %v1551_v37 = vld [vmem:[#allocation8 + $0x48] sm:$0xff] }
  0x6e   :  { %2293 = vst [vmem:[#allocation132_spill] sm:$0xff] %v1547_v22  ;;  %2294 = vst [vmem:[#allocation133_spill] sm:$0xff] %v1549_v61  ;;  %v1553_v62 = vld [vmem:[#allocation8 + $0x50] sm:$0xff]  ;;  %v1555_v1 = vld [vmem:[#allocation8 + $0x58] sm:$0xff] }
  0x6f   :  { %2295 = vst [vmem:[#allocation134_spill] sm:$0xff] %v1551_v37  ;;  %2296 = vst [vmem:[#allocation135_spill] sm:$0xff] %v1553_v62  ;;  %v1557_v57 = vld [vmem:[#allocation8 + $0x60] sm:$0xff]  ;;  %v1559_v30 = vld [vmem:[#allocation8 + $0x68] sm:$0xff] }
  0x70   :  { %2297 = vst [vmem:[#allocation136_spill] sm:$0xff] %v1555_v1  ;;  %2298 = vst [vmem:[#allocation137_spill] sm:$0xff] %v1557_v57  ;;  %v1561_v58 = vld [vmem:[#allocation8 + $0x70] sm:$0xff]  ;;  %v1563_v38 = vld [vmem:[#allocation8 + $0x78] sm:$0xff] }
  0x71   :  { %2299 = vst [vmem:[#allocation138_spill] sm:$0xff] %v1559_v30  ;;  %2300 = vst [vmem:[#allocation139_spill] sm:$0xff] %v1561_v58  ;;  %v1565_v21 = vld [vmem:[#allocation8 + $0x80] sm:$0xff]  ;;  %v1567_v46 = vld [vmem:[#allocation8 + $0x88] sm:$0xff] }
  0x72   :  { %2301 = vst [vmem:[#allocation140_spill] sm:$0xff] %v1563_v38  ;;  %2302 = vst [vmem:[#allocation141_spill] sm:$0xff] %v1565_v21  ;;  %v1569_v22 = vld [vmem:[#allocation8 + $0x90] sm:$0xff]  ;;  %v1571_v61 = vld [vmem:[#allocation8 + $0x98] sm:$0xff] }
  0x73   :  { %2303 = vst [vmem:[#allocation142_spill] sm:$0xff] %v1567_v46  ;;  %2304 = vst [vmem:[#allocation143_spill] sm:$0xff] %v1569_v22  ;;  %v1573_v37 = vld [vmem:[#allocation8 + $0xa0] sm:$0xff]  ;;  %v1575_v62 = vld [vmem:[#allocation8 + $0xa8] sm:$0xff] }
  0x74   :  { %2305 = vst [vmem:[#allocation144_spill] sm:$0xff] %v1571_v61  ;;  %2306 = vst [vmem:[#allocation145_spill] sm:$0xff] %v1573_v37  ;;  %v1577_v1 = vld [vmem:[#allocation8 + $0xb0] sm:$0xff]  ;;  %v1579_v57 = vld [vmem:[#allocation8 + $0xb8] sm:$0xff] }
  0x75   :  { %2307 = vst [vmem:[#allocation146_spill] sm:$0xff] %v1575_v62  ;;  %2308 = vst [vmem:[#allocation147_spill] sm:$0xff] %v1577_v1  ;;  %v1581_v30 = vld [vmem:[#allocation8 + $0xc0] sm:$0xff]  ;;  %v1583_v58 = vld [vmem:[#allocation8 + $0xc8] sm:$0xff] }
  0x76   :  { %2309 = vst [vmem:[#allocation148_spill] sm:$0xff] %v1579_v57  ;;  %2310 = vst [vmem:[#allocation149_spill] sm:$0xff] %v1581_v30  ;;  %v1585_v38 = vld [vmem:[#allocation8 + $0xd0] sm:$0xff]  ;;  %v1587_v21 = vld [vmem:[#allocation8 + $0xd8] sm:$0xff] }
  0x77   :  { %2311 = vst [vmem:[#allocation150_spill] sm:$0xff] %v1583_v58  ;;  %2312 = vst [vmem:[#allocation151_spill] sm:$0xff] %v1585_v38  ;;  %v1589_v46 = vld [vmem:[#allocation8 + $0xe0] sm:$0xff]  ;;  %v1591_v22 = vld [vmem:[#allocation8 + $0xe8] sm:$0xff] }
  0x78   :  { %2313 = vst [vmem:[#allocation152_spill] sm:$0xff] %v1587_v21  ;;  %2314 = vst [vmem:[#allocation153_spill] sm:$0xff] %v1589_v46  ;;  %v1593_v61 = vld [vmem:[#allocation8 + $0xf0] sm:$0xff]  ;;  %v1595_v37 = vld [vmem:[#allocation8 + $0xf8] sm:$0xff] }
  0x79   :  { %2315 = vst [vmem:[#allocation154_spill] sm:$0xff] %v1591_v22  ;;  %2316 = vst [vmem:[#allocation155_spill] sm:$0xff] %v1593_v61  ;;  %v1597_v62 = vld [vmem:[#allocation8 + $0x100] sm:$0xff]  ;;  %v1599_v1 = vld [vmem:[#allocation8 + $0x108] sm:$0xff] }
  0x7a   :  { %2317 = vst [vmem:[#allocation156_spill] sm:$0xff] %v1595_v37  ;;  %2318 = vst [vmem:[#allocation157_spill] sm:$0xff] %v1597_v62  ;;  %v1601_v57 = vld [vmem:[#allocation8 + $0x110] sm:$0xff]  ;;  %v1603_v30 = vld [vmem:[#allocation8 + $0x118] sm:$0xff] }
  0x7b   :  { %2319 = vst [vmem:[#allocation158_spill] sm:$0xff] %v1599_v1  ;;  %2320 = vst [vmem:[#allocation159_spill] sm:$0xff] %v1601_v57  ;;  %v1605_v58 = vld [vmem:[#allocation8 + $0x120] sm:$0xff]  ;;  %v1607_v38 = vld [vmem:[#allocation8 + $0x128] sm:$0xff] }
  0x7c   :  { %2321 = vst [vmem:[#allocation160_spill] sm:$0xff] %v1603_v30  ;;  %2322 = vst [vmem:[#allocation161_spill] sm:$0xff] %v1605_v58  ;;  %v1609_v21 = vld [vmem:[#allocation8 + $0x130] sm:$0xff]  ;;  %v1611_v46 = vld [vmem:[#allocation8 + $0x138] sm:$0xff] }
  0x7d   :  { %2323 = vst [vmem:[#allocation162_spill] sm:$0xff] %v1607_v38  ;;  %2324 = vst [vmem:[#allocation163_spill] sm:$0xff] %v1609_v21  ;;  %v1613_v22 = vld [vmem:[#allocation8 + $0x140] sm:$0xff]  ;;  %v1615_v61 = vld [vmem:[#allocation8 + $0x148] sm:$0xff] }
  0x7e   :  { %2325 = vst [vmem:[#allocation164_spill] sm:$0xff] %v1611_v46  ;;  %2326 = vst [vmem:[#allocation165_spill] sm:$0xff] %v1613_v22  ;;  %v1617_v37 = vld [vmem:[#allocation8 + $0x150] sm:$0xff]  ;;  %v1619_v62 = vld [vmem:[#allocation8 + $0x158] sm:$0xff] }
  0x7f   :  { %2327 = vst [vmem:[#allocation166_spill] sm:$0xff] %v1615_v61  ;;  %2328 = vst [vmem:[#allocation167_spill] sm:$0xff] %v1617_v37  ;;  %v1621_v1 = vld [vmem:[#allocation8 + $0x160] sm:$0xff]  ;;  %v1623_v57 = vld [vmem:[#allocation8 + $0x168] sm:$0xff] }
  0x80   :  { %2329 = vst [vmem:[#allocation168_spill] sm:$0xff] %v1619_v62  ;;  %2330 = vst [vmem:[#allocation169_spill] sm:$0xff] %v1621_v1  ;;  %v1625_v30 = vld [vmem:[#allocation8 + $0x170] sm:$0xff]  ;;  %v1627_v58 = vld [vmem:[#allocation8 + $0x178] sm:$0xff] }
  0x81   :  { %2331 = vst [vmem:[#allocation170_spill] sm:$0xff] %v1623_v57  ;;  %2332 = vst [vmem:[#allocation171_spill] sm:$0xff] %v1625_v30  ;;  %v1629_v38 = vld [vmem:[#allocation8 + $0x180] sm:$0xff]  ;;  %v1631_v21 = vld [vmem:[#allocation8 + $0x188] sm:$0xff] }
  0x82   :  { %2333 = vst [vmem:[#allocation172_spill] sm:$0xff] %v1627_v58  ;;  %2334 = vst [vmem:[#allocation173_spill] sm:$0xff] %v1629_v38  ;;  %v1633_v46 = vld [vmem:[#allocation8 + $0x190] sm:$0xff]  ;;  %v1635_v22 = vld [vmem:[#allocation8 + $0x198] sm:$0xff] }
  0x83   :  { %2335 = vst [vmem:[#allocation174_spill] sm:$0xff] %v1631_v21  ;;  %2336 = vst [vmem:[#allocation175_spill] sm:$0xff] %v1633_v46  ;;  %v1637_v61 = vld [vmem:[#allocation8 + $0x1a0] sm:$0xff]  ;;  %v1639_v37 = vld [vmem:[#allocation8 + $0x1a8] sm:$0xff] }
  0x84   :  { %2337 = vst [vmem:[#allocation176_spill] sm:$0xff] %v1635_v22  ;;  %2338 = vst [vmem:[#allocation177_spill] sm:$0xff] %v1637_v61  ;;  %v1641_v62 = vld [vmem:[#allocation8 + $0x1b0] sm:$0xff]  ;;  %v1643_v1 = vld [vmem:[#allocation8 + $0x1b8] sm:$0xff] }
  0x85   :  { %2339 = vst [vmem:[#allocation178_spill] sm:$0xff] %v1639_v37  ;;  %2340 = vst [vmem:[#allocation179_spill] sm:$0xff] %v1641_v62  ;;  %v1645_v57 = vld [vmem:[#allocation8 + $0x1c0] sm:$0xff]  ;;  %v1647_v30 = vld [vmem:[#allocation8 + $0x1c8] sm:$0xff] }
  0x86   :  { %2341 = vst [vmem:[#allocation180_spill] sm:$0xff] %v1643_v1  ;;  %2342 = vst [vmem:[#allocation181_spill] sm:$0xff] %v1645_v57  ;;  %v1649_v58 = vld [vmem:[#allocation8 + $0x1d0] sm:$0xff]  ;;  %v1651_v38 = vld [vmem:[#allocation8 + $0x1d8] sm:$0xff] }
  0x87   :  { %2343 = vst [vmem:[#allocation182_spill] sm:$0xff] %v1647_v30  ;;  %2344 = vst [vmem:[#allocation183_spill] sm:$0xff] %v1649_v58  ;;  %v1653_v21 = vld [vmem:[#allocation8 + $0x1e0] sm:$0xff]  ;;  %v1655_v46 = vld [vmem:[#allocation8 + $0x1e8] sm:$0xff] }
  0x88   :  { %2345 = vst [vmem:[#allocation184_spill] sm:$0xff] %v1651_v38  ;;  %2346 = vst [vmem:[#allocation185_spill] sm:$0xff] %v1653_v21  ;;  %v1657_v22 = vld [vmem:[#allocation8 + $0x1f0] sm:$0xff]  ;;  %v1659_v61 = vld [vmem:[#allocation8 + $0x1f8] sm:$0xff] }
  0x89   :  { %2347 = vst [vmem:[#allocation186_spill] sm:$0xff] %v1655_v46  ;;  %2348 = vst [vmem:[#allocation187_spill] sm:$0xff] %v1657_v22  ;;  %v1661_v37 = vld [vmem:[#allocation8 + $0x200] sm:$0xff]  ;;  %v1663_v62 = vld [vmem:[#allocation8 + $0x208] sm:$0xff] }
  0x8a   :  { %2349 = vst [vmem:[#allocation188_spill] sm:$0xff] %v1659_v61  ;;  %2350 = vst [vmem:[#allocation189_spill] sm:$0xff] %v1661_v37  ;;  %v1665_v1 = vld [vmem:[#allocation8 + $0x210] sm:$0xff]  ;;  %v1667_v57 = vld [vmem:[#allocation8 + $0x218] sm:$0xff] }
  0x8b   :  { %2351 = vst [vmem:[#allocation190_spill] sm:$0xff] %v1663_v62  ;;  %2352 = vst [vmem:[#allocation191_spill] sm:$0xff] %v1665_v1  ;;  %v1669_v30 = vld [vmem:[#allocation8 + $0x220] sm:$0xff]  ;;  %v1671_v58 = vld [vmem:[#allocation8 + $0x228] sm:$0xff] }
  0x8c   :  { %2353 = vst [vmem:[#allocation192_spill] sm:$0xff] %v1667_v57  ;;  %2354 = vst [vmem:[#allocation193_spill] sm:$0xff] %v1669_v30  ;;  %v1673_v38 = vld [vmem:[#allocation8 + $0x230] sm:$0xff]  ;;  %v1675_v21 = vld [vmem:[#allocation8 + $0x238] sm:$0xff] }
  0x8d   :  { %2355 = vst [vmem:[#allocation194_spill] sm:$0xff] %v1671_v58  ;;  %2356 = vst [vmem:[#allocation195_spill] sm:$0xff] %v1673_v38  ;;  %v1677_v46 = vld [vmem:[#allocation8 + $0x240] sm:$0xff]  ;;  %v1679_v22 = vld [vmem:[#allocation8 + $0x248] sm:$0xff] }
  0x8e   :  { %2357 = vst [vmem:[#allocation196_spill] sm:$0xff] %v1675_v21  ;;  %2358 = vst [vmem:[#allocation197_spill] sm:$0xff] %v1677_v46  ;;  %v1681_v61 = vld [vmem:[#allocation8 + $0x250] sm:$0xff]  ;;  %v1683_v37 = vld [vmem:[#allocation8 + $0x258] sm:$0xff] }
  0x8f   :  { %2359 = vst [vmem:[#allocation198_spill] sm:$0xff] %v1679_v22  ;;  %2360 = vst [vmem:[#allocation199_spill] sm:$0xff] %v1681_v61  ;;  %v1685_v62 = vld [vmem:[#allocation8 + $0x260] sm:$0xff]  ;;  %v1687_v1 = vld [vmem:[#allocation8 + $0x268] sm:$0xff] }
  0x90   :  { %2361 = vst [vmem:[#allocation200_spill] sm:$0xff] %v1683_v37  ;;  %2362 = vst [vmem:[#allocation201_spill] sm:$0xff] %v1685_v62  ;;  %v1689_v57 = vld [vmem:[#allocation8 + $0x270] sm:$0xff]  ;;  %v1691_v30 = vld [vmem:[#allocation8 + $0x278] sm:$0xff] }
  0x91   :  { %2363 = vst [vmem:[#allocation202_spill] sm:$0xff] %v1687_v1  ;;  %2364 = vst [vmem:[#allocation203_spill] sm:$0xff] %v1689_v57  ;;  %v1693_v58 = vld [vmem:[#allocation8 + $0x280] sm:$0xff]  ;;  %v1695_v38 = vld [vmem:[#allocation8 + $0x288] sm:$0xff] }
  0x92   :  { %2365 = vst [vmem:[#allocation204_spill] sm:$0xff] %v1691_v30  ;;  %2366 = vst [vmem:[#allocation205_spill] sm:$0xff] %v1693_v58  ;;  %v1697_v21 = vld [vmem:[#allocation8 + $0x290] sm:$0xff]  ;;  %v1699_v46 = vld [vmem:[#allocation8 + $0x298] sm:$0xff] }
  0x93   :  { %2367 = vst [vmem:[#allocation206_spill] sm:$0xff] %v1695_v38  ;;  %2368 = vst [vmem:[#allocation207_spill] sm:$0xff] %v1697_v21  ;;  %v1701_v22 = vld [vmem:[#allocation8 + $0x2a0] sm:$0xff]  ;;  %v1703_v61 = vld [vmem:[#allocation8 + $0x2a8] sm:$0xff] }
  0x94   :  { %2369 = vst [vmem:[#allocation208_spill] sm:$0xff] %v1699_v46  ;;  %2370 = vst [vmem:[#allocation209_spill] sm:$0xff] %v1701_v22  ;;  %v1705_v37 = vld [vmem:[#allocation8 + $0x2b0] sm:$0xff]  ;;  %v1707_v62 = vld [vmem:[#allocation8 + $0x2b8] sm:$0xff] }
  0x95   :  { %2371 = vst [vmem:[#allocation210_spill] sm:$0xff] %v1703_v61  ;;  %2372 = vst [vmem:[#allocation211_spill] sm:$0xff] %v1705_v37  ;;  %v1709_v1 = vld [vmem:[#allocation8 + $0x2c0] sm:$0xff]  ;;  %v1711_v57 = vld [vmem:[#allocation8 + $0x2c8] sm:$0xff] }
  0x96   :  { %2373 = vst [vmem:[#allocation212_spill] sm:$0xff] %v1707_v62  ;;  %2374 = vst [vmem:[#allocation213_spill] sm:$0xff] %v1709_v1  ;;  %v1713_v30 = vld [vmem:[#allocation8 + $0x2d0] sm:$0xff]  ;;  %v1715_v58 = vld [vmem:[#allocation8 + $0x2d8] sm:$0xff] }
  0x97   :  { %2375 = vst [vmem:[#allocation214_spill] sm:$0xff] %v1711_v57  ;;  %2376 = vst [vmem:[#allocation215_spill] sm:$0xff] %v1713_v30  ;;  %v1717_v38 = vld [vmem:[#allocation8 + $0x2e0] sm:$0xff]  ;;  %v1719_v21 = vld [vmem:[#allocation8 + $0x2e8] sm:$0xff] }
  0x98   :  { %2377 = vst [vmem:[#allocation216_spill] sm:$0xff] %v1715_v58  ;;  %2378 = vst [vmem:[#allocation217_spill] sm:$0xff] %v1717_v38  ;;  %v1721_v46 = vld [vmem:[#allocation8 + $0x2f0] sm:$0xff]  ;;  %v1723_v22 = vld [vmem:[#allocation8 + $0x2f8] sm:$0xff] }
  0x99   :  { %2379 = vst [vmem:[#allocation218_spill] sm:$0xff] %v1719_v21  ;;  %2380 = vst [vmem:[#allocation219_spill] sm:$0xff] %v1721_v46  ;;  %v1725_v61 = vld [vmem:[#allocation8 + $0x300] sm:$0xff]  ;;  %v1727_v37 = vld [vmem:[#allocation8 + $0x308] sm:$0xff] }
  0x9a   :  { %2381 = vst [vmem:[#allocation220_spill] sm:$0xff] %v1723_v22  ;;  %2382 = vst [vmem:[#allocation221_spill] sm:$0xff] %v1725_v61  ;;  %v1729_v62 = vld [vmem:[#allocation8 + $0x310] sm:$0xff]  ;;  %v1731_v1 = vld [vmem:[#allocation8 + $0x318] sm:$0xff] }
  0x9b   :  { %2383 = vst [vmem:[#allocation222_spill] sm:$0xff] %v1727_v37  ;;  %2384 = vst [vmem:[#allocation223_spill] sm:$0xff] %v1729_v62  ;;  %v1733_v57 = vld [vmem:[#allocation8 + $0x320] sm:$0xff]  ;;  %v1735_v30 = vld [vmem:[#allocation8 + $0x328] sm:$0xff] }
  0x9c   :  { %2385 = vst [vmem:[#allocation224_spill] sm:$0xff] %v1731_v1  ;;  %2386 = vst [vmem:[#allocation225_spill] sm:$0xff] %v1733_v57  ;;  %v1737_v58 = vld [vmem:[#allocation8 + $0x330] sm:$0xff]  ;;  %v1739_v38 = vld [vmem:[#allocation8 + $0x338] sm:$0xff] }
  0x9d   :  { %2387 = vst [vmem:[#allocation226_spill] sm:$0xff] %v1735_v30  ;;  %2388 = vst [vmem:[#allocation227_spill] sm:$0xff] %v1737_v58  ;;  %v1741_v21 = vld [vmem:[#allocation8 + $0x340] sm:$0xff]  ;;  %v1743_v46 = vld [vmem:[#allocation8 + $0x348] sm:$0xff] }
  0x9e   :  { %2389 = vst [vmem:[#allocation228_spill] sm:$0xff] %v1739_v38  ;;  %2390 = vst [vmem:[#allocation229_spill] sm:$0xff] %v1741_v21  ;;  %v1745_v22 = vld [vmem:[#allocation8 + $0x350] sm:$0xff]  ;;  %v1747_v61 = vld [vmem:[#allocation8 + $0x358] sm:$0xff] }
  0x9f   :  { %2391 = vst [vmem:[#allocation230_spill] sm:$0xff] %v1743_v46  ;;  %2392 = vst [vmem:[#allocation231_spill] sm:$0xff] %v1745_v22  ;;  %v1749_v37 = vld [vmem:[#allocation8 + $0x360] sm:$0xff]  ;;  %v1751_v62 = vld [vmem:[#allocation8 + $0x368] sm:$0xff] }
  0xa0   :  { %2393 = vst [vmem:[#allocation232_spill] sm:$0xff] %v1747_v61  ;;  %2394 = vst [vmem:[#allocation233_spill] sm:$0xff] %v1749_v37  ;;  %v1753_v1 = vld [vmem:[#allocation8 + $0x370] sm:$0xff]  ;;  %v1755_v57 = vld [vmem:[#allocation8 + $0x378] sm:$0xff] }
  0xa1   :  { %2395 = vst [vmem:[#allocation234_spill] sm:$0xff] %v1751_v62  ;;  %2396 = vst [vmem:[#allocation235_spill] sm:$0xff] %v1753_v1  ;;  %v1757_v30 = vld [vmem:[#allocation8 + $0x380] sm:$0xff]  ;;  %v1759_v58 = vld [vmem:[#allocation8 + $0x388] sm:$0xff] }
  0xa2   :  { %2397 = vst [vmem:[#allocation236_spill] sm:$0xff] %v1755_v57  ;;  %2398 = vst [vmem:[#allocation237_spill] sm:$0xff] %v1757_v30  ;;  %v1761_v38 = vld [vmem:[#allocation8 + $0x390] sm:$0xff]  ;;  %v1763_v21 = vld [vmem:[#allocation8 + $0x398] sm:$0xff] }
  0xa3   :  { %2399 = vst [vmem:[#allocation238_spill] sm:$0xff] %v1759_v58  ;;  %2400 = vst [vmem:[#allocation239_spill] sm:$0xff] %v1761_v38  ;;  %v1765_v46 = vld [vmem:[#allocation8 + $0x3a0] sm:$0xff]  ;;  %v1767_v22 = vld [vmem:[#allocation8 + $0x3a8] sm:$0xff] }
  0xa4   :  { %2401 = vst [vmem:[#allocation240_spill] sm:$0xff] %v1763_v21  ;;  %2402 = vst [vmem:[#allocation241_spill] sm:$0xff] %v1765_v46  ;;  %v1769_v61 = vld [vmem:[#allocation8 + $0x3b0] sm:$0xff]  ;;  %v1771_v37 = vld [vmem:[#allocation8 + $0x3b8] sm:$0xff]  ;;  %848 = sbr.rel (%p861_p1) target bundleno = 994 (0x3e2), region = 66 }
  0xa5   :  { %2403 = vst [vmem:[#allocation242_spill] sm:$0xff] %v1767_v22  ;;  %2404 = vst [vmem:[#allocation243_spill] sm:$0xff] %v1769_v61  ;;  %v1773_v62 = vld [vmem:[#allocation8 + $0x3c0] sm:$0xff]  ;;  %v1775_v1 = vld [vmem:[#allocation8 + $0x3c8] sm:$0xff] }
  0xa6   :  { %2405 = vst [vmem:[#allocation244_spill] sm:$0xff] %v1771_v37  ;;  %2406 = vst [vmem:[#allocation245_spill] sm:$0xff] %v1773_v62  ;;  %v1777_v57 = vld [vmem:[#allocation8 + $0x3d0] sm:$0xff]  ;;  %v1779_v30 = vld [vmem:[#allocation8 + $0x3d8] sm:$0xff]  ;;  %v1797_v37 = vmov 0.0  }
  0xa7   :  { %2407 = vst [vmem:[#allocation246_spill] sm:$0xff] %v1775_v1  ;;  %2408 = vst [vmem:[#allocation247_spill] sm:$0xff] %v1777_v57  ;;  %v1781_v58 = vld [vmem:[#allocation8 + $0x3e0] sm:$0xff]  ;;  %v1783_v38 = vld [vmem:[#allocation8 + $0x3e8] sm:$0xff] }
  0xa8   :  { %2409 = vst [vmem:[#allocation248_spill] sm:$0xff] %v1779_v30  ;;  %v1785_v21 = vld [vmem:[#allocation8 + $0x3f0] sm:$0xff]  ;;  %v1787_v46 = vld [vmem:[#allocation8 + $0x3f8] sm:$0xff]  ;;  %v1792_v61 = vld [vmem:[%s2170_s7] sm:$0xf] }
  0xa9   :  { %v1799_v22 = vmov 0.0   ;;  %v1801_v57 = vmov 0.0   ;;  %v1803_v62 = vmov 0.0   ;;  %v1805_v30 = vmov 0.0  }
  0xaa   :  { %v1807_v1 = vmov 0.0  }
  0xab LB: > { %2410 = vst [vmem:[#allocation249_spill] sm:$0xff] %v1140_v22  ;;  %2411 = vst [vmem:[#allocation250_spill] sm:$0xff] %v1144_v57  ;;  %v2412_v50 = vld [vmem:[#allocation61_spill] sm:$0xff]  ;;  %v1173_v37 = vmov 0   ;;  %v1174_v22 = vmov 0.0   ;;  %v814_v57 = vstv %s1160_s27  ;;  %s862_s7 = sshll.u32 %s1160_s27, 3  ;;  %525 = vmatprep.mubr.f32.mxu1 %v1156_v1  ;;  %s1160_s27 = sphi %s1809_s27, %s353_s27   ;;  %v1156_v1 = vphi %v1807_v1, %v2652_v1   ;;  %v1152_v30 = vphi %v1805_v30, %v624_v30   ;;  %v1148_v62 = vphi %v1803_v62, %v813_v62   ;;  %v1144_v57 = vphi %v1801_v57, %v811_v57   ;;  %v1140_v22 = vphi %v1799_v22, %v2651_v22  }
  0xac   : > { %461 = vmatprep.subr.mxu1 %v2412_v50  ;;  %991 = vset.pattern.permute.xlu0 %v1173_v37  ;;  %v2413_v18 = vld [vmem:[#allocation29_spill] sm:$0xff]  ;;  %vm1175_vm0 = vmmov 0   ;;  %v2414_v2 = vld [vmem:[#allocation14_spill] sm:$0xff]  ;;  %s362_s30 = scalar_lea.vmem %s2164_s1, %s862_s7  ;;  %v2415_v16 = vld [vmem:[#allocation28_spill] sm:$0xff]  ;;  %s353_s27 = sadd.s32 1, %s1160_s27  }
  0xad   : > { %888 = vmatprep.subr.mxu0 %v1174_v22  ;;  %920 = vmatprep.mubr.msk.f32.mxu0 %vm1175_vm0, %v1174_v22  ;;  %vm815_vm1 = vcmp.eq.s32.totalorder %v2414_v2, %v814_v57  ;;  %v363_v50 = vld [vmem:[%s362_s30] sm:$0xff]  ;;  %v2416_v15 = vld [vmem:[#allocation27_spill] sm:$0xff]  ;;  %v2417_v14 = vld [vmem:[#allocation26_spill] sm:$0xff]  ;;  %p352_p2 = scmp.ge.s32.totalorder %s353_s27, %s2163_s0 }
  0xae   : > { %889 = vmatpush3.msra.mxu0 %v2413_v18  ;;  %462 = vmatpush1.msra.mxu1 %v1392_v49  ;;  %v816_v18 = vsel %vm815_vm1, 1, %v1173_v37  ;;  %v2418_v13 = vld [vmem:[#allocation25_spill] sm:$0xff]  ;;  %v2419_v0 = vld [vmem:[#allocation52_spill] sm:$0xff]  ;;  %v2421_v11 = vld [vmem:[#allocation23_spill] sm:$0xff] }
  0xaf   : > { %890 = vmatprep.subr.mxu0 %v1174_v22  ;;  %463 = vmatprep.subr.mxu1 %v1386_v42  ;;  %v2420_v12 = vld [vmem:[#allocation24_spill] sm:$0xff]  ;;  %v2422_v10 = vld [vmem:[#allocation22_spill] sm:$0xff]  ;;  %v2423_v9 = vld [vmem:[#allocation21_spill] sm:$0xff] }
  0xb0   : > { %891 = vmatpush3.msra.mxu0 %v1268_v17  ;;  %365 = vperm.xlu0 %991, %v363_v50   ;;  %v2424_v8 = vld [vmem:[#allocation20_spill] sm:$0xff]  ;;  %v2425_v7 = vld [vmem:[#allocation19_spill] sm:$0xff]  ;;  %v2426_v6 = vld [vmem:[#allocation18_spill] sm:$0xff] }
  0xb1   : > { %892 = vmatprep.subr.mxu0 %v1174_v22  ;;  %464 = vmatpush1.msra.mxu1 %v1384_v41  ;;  %v2427_v5 = vld [vmem:[#allocation17_spill] sm:$0xff]  ;;  %v2428_v4 = vld [vmem:[#allocation16_spill] sm:$0xff]  ;;  %v2429_v3 = vld [vmem:[#allocation15_spill] sm:$0xff] }
  0xb2   : > { %893 = vmatpush3.msra.mxu0 %v2415_v16  ;;  %465 = vmatprep.subr.mxu1 %v1378_v34  ;;  %v2432_v50 = vld [vmem:[#allocation115_spill] sm:$0xff]  ;;  %v2433_v57 = vld [vmem:[#allocation112_spill] sm:$0xff] }
  0xb3   : > { %894 = vmatprep.subr.mxu0 %v1174_v22  ;;  %466 = vmatpush1.msra.mxu1 %v1376_v33  ;;  %v2434_v37 = vld [vmem:[#allocation111_spill] sm:$0xff] }
  0xb4   : > { %895 = vmatpush3.msra.mxu0 %v2416_v15  ;;  %818 = vperm.xlu0 %991, %v816_v18   ;;  %v2430_v18 = vld [vmem:[#allocation119_spill] sm:$0xff] }
  0xb5   : > { %896 = vmatprep.subr.mxu0 %v1174_v22  ;;  %467 = vmatprep.subr.mxu1 %v1370_v26  ;;  %v2436_v2 = vld [vmem:[#allocation107_spill] sm:$0xff] }
  0xb6   : > { %897 = vmatpush3.msra.mxu0 %v2417_v14  ;;  %468 = vmatpush1.msra.mxu1 %v1368_v25 }
  0xb7   : > { %898 = vmatprep.subr.mxu0 %v1174_v22  ;;  %469 = vmatprep.subr.mxu1 %v2419_v0  ;;  %v2435_v0 = vld [vmem:[#allocation108_spill] sm:$0xff] }
  0xb8   : > { %899 = vmatpush3.msra.mxu0 %v2418_v13  ;;  %470 = vmatpush1.msra.mxu1 %v1360_v63 }
  0xb9   : > { %900 = vmatprep.subr.mxu0 %v1174_v22  ;;  %471 = vmatprep.subr.mxu1 %v1354_v60 }
  0xba   : > { %901 = vmatpush3.msra.mxu0 %v2420_v12  ;;  %472 = vmatpush1.msra.mxu1 %v1352_v59 }
  0xbb   : > { %902 = vmatprep.subr.mxu0 %v1174_v22  ;;  %473 = vmatprep.subr.mxu1 %v1346_v56 }
  0xbc   : > { %903 = vmatpush3.msra.mxu0 %v2421_v11  ;;  %474 = vmatpush1.msra.mxu1 %v1344_v55 }
  0xbd   : > { %904 = vmatprep.subr.mxu0 %v1174_v22  ;;  %475 = vmatprep.subr.mxu1 %v1338_v52 }
  0xbe   : > { %905 = vmatpush3.msra.mxu0 %v2422_v10  ;;  %476 = vmatpush1.msra.mxu1 %v1336_v51 }
  0xbf   : > { %906 = vmatprep.subr.mxu0 %v1174_v22  ;;  %477 = vmatprep.subr.mxu1 %v1330_v48 }
  0xc0   : > { %907 = vmatpush3.msra.mxu0 %v2423_v9  ;;  %478 = vmatpush1.msra.mxu1 %v1328_v47 }
  0xc1   : > { %908 = vmatprep.subr.mxu0 %v1174_v22  ;;  %479 = vmatprep.subr.mxu1 %v1322_v44 }
  0xc2   : > { %909 = vmatpush3.msra.mxu0 %v2424_v8  ;;  %480 = vmatpush1.msra.mxu1 %v1320_v43 }
  0xc3   : > { %910 = vmatprep.subr.mxu0 %v1174_v22  ;;  %481 = vmatprep.subr.mxu1 %v1314_v40 }
  0xc4   : > { %911 = vmatpush3.msra.mxu0 %v2425_v7  ;;  %482 = vmatpush1.msra.mxu1 %v1312_v39  ;;  %v2469_v7 = vld [vmem:[#allocation53_spill] sm:$0xff] }
  0xc5   : > { %912 = vmatprep.subr.mxu0 %v1174_v22  ;;  %483 = vmatprep.subr.mxu1 %v1306_v36 }
  0xc6   : > { %913 = vmatpush3.msra.mxu0 %v2426_v6  ;;  %484 = vmatpush1.msra.mxu1 %v1304_v35  ;;  %v2440_v6 = vld [vmem:[#allocation99_spill] sm:$0xff] }
  0xc7   : > { %914 = vmatprep.subr.mxu0 %v1174_v22  ;;  %485 = vmatprep.subr.mxu1 %v1298_v32 }
  0xc8   : > { %915 = vmatpush3.msra.mxu0 %v2427_v5  ;;  %486 = vmatpush1.msra.mxu1 %v1296_v31  ;;  %v2439_v5 = vld [vmem:[#allocation100_spill] sm:$0xff] }
  0xc9   : > { %916 = vmatprep.subr.mxu0 %v1174_v22  ;;  %487 = vmatprep.subr.mxu1 %v1290_v28 }
  0xca   : > { %917 = vmatpush3.msra.mxu0 %v2428_v4  ;;  %488 = vmatpush1.msra.mxu1 %v1288_v27  ;;  %v2438_v4 = vld [vmem:[#allocation103_spill] sm:$0xff] }
  0xcb   : > { %918 = vmatprep.subr.mxu0 %v1174_v22  ;;  %489 = vmatprep.subr.mxu1 %v1282_v24  ;;  %v2431_v22 = vld [vmem:[#allocation116_spill] sm:$0xff] }
  0xcc   : > { %919 = vmatpush3.msra.mxu0 %v2429_v3  ;;  %490 = vmatpush1.msra.mxu1 %v1280_v23  ;;  %v2437_v3 = vld [vmem:[#allocation104_spill] sm:$0xff] }
  0xcd   : > { %532 = vmatprep.subr.mxu0 %v1398_v54  ;;  %491 = vmatprep.subr.mxu1 %v1274_v20 }
  0xce   : > { %492 = vmatpush1.msra.mxu1 %v1272_v19 }
  0xcf   : > { %493 = vmatprep.subr.mxu1 %v1522_v45 }
  0xd0   : > { %494 = vmatpush2.msra.mxu1 %v1520_v53 }
  0xd1   : > { %495 = vmatprep.subr.mxu1 %v1514_v29 }
  0xd2   : > { %496 = vmatpush2.msra.mxu1 %v2430_v18  ;;  %v2441_v18 = vld [vmem:[#allocation96_spill] sm:$0xff] }
  0xd3   : > { %497 = vmatprep.subr.mxu1 %v2431_v22  ;;  %v2442_v22 = vld [vmem:[#allocation95_spill] sm:$0xff] }
  0xd4   : > { %498 = vmatpush2.msra.mxu1 %v2432_v50  ;;  %v2443_v50 = vld [vmem:[#allocation92_spill] sm:$0xff] }
  0xd5   : > { %499 = vmatprep.subr.mxu1 %v2433_v57  ;;  %v2444_v57 = vld [vmem:[#allocation91_spill] sm:$0xff] }
  0xd6   : > { %500 = vmatpush2.msra.mxu1 %v2434_v37  ;;  %v2445_v37 = vld [vmem:[#allocation88_spill] sm:$0xff] }
  0xd7   : > { %501 = vmatprep.subr.mxu1 %v2435_v0  ;;  %v2446_v0 = vld [vmem:[#allocation87_spill] sm:$0xff] }
  0xd8   : > { %502 = vmatpush2.msra.mxu1 %v2436_v2  ;;  %v2447_v2 = vld [vmem:[#allocation84_spill] sm:$0xff] }
  0xd9   : > { %503 = vmatprep.subr.mxu1 %v2437_v3  ;;  %v2448_v3 = vld [vmem:[#allocation83_spill] sm:$0xff] }
  0xda   : > { %504 = vmatpush2.msra.mxu1 %v2438_v4  ;;  %v2449_v4 = vld [vmem:[#allocation80_spill] sm:$0xff] }
  0xdb   : > { %505 = vmatprep.subr.mxu1 %v2439_v5  ;;  %v2450_v5 = vld [vmem:[#allocation79_spill] sm:$0xff] }
  0xdc   : > { %506 = vmatpush2.msra.mxu1 %v2440_v6  ;;  %v2451_v6 = vld [vmem:[#allocation76_spill] sm:$0xff] }
  0xdd   : > { %507 = vmatprep.subr.mxu1 %v2441_v18  ;;  %v2452_v18 = vld [vmem:[#allocation75_spill] sm:$0xff] }
  0xde   : > { %508 = vmatpush2.msra.mxu1 %v2442_v22  ;;  %v2453_v22 = vld [vmem:[#allocation72_spill] sm:$0xff] }
  0xdf   : > { %509 = vmatprep.subr.mxu1 %v2443_v50  ;;  %v2454_v50 = vld [vmem:[#allocation71_spill] sm:$0xff] }
  0xe0   : > { %510 = vmatpush2.msra.mxu1 %v2444_v57  ;;  %v2455_v57 = vld [vmem:[#allocation68_spill] sm:$0xff] }
  0xe1   : > { %511 = vmatprep.subr.mxu1 %v2445_v37  ;;  %v2456_v37 = vld [vmem:[#allocation67_spill] sm:$0xff] }
  0xe2   : > { %512 = vmatpush2.msra.mxu1 %v2446_v0  ;;  %v2457_v0 = vld [vmem:[#allocation64_spill] sm:$0xff] }
  0xe3   : > { %513 = vmatprep.subr.mxu1 %v2447_v2  ;;  %v2458_v2 = vld [vmem:[#allocation63_spill] sm:$0xff] }
  0xe4   : > { %514 = vmatpush2.msra.mxu1 %v2448_v3  ;;  %v2459_v3 = vld [vmem:[#allocation186_spill] sm:$0xff] }
  0xe5   : > { %515 = vmatprep.subr.mxu1 %v2449_v4 }
  0xe6   : > { %516 = vmatpush2.msra.mxu1 %v2450_v5  ;;  %v2460_v5 = vld [vmem:[#allocation13_spill] sm:$0xff] }
  0xe7   : > { %517 = vmatprep.subr.mxu1 %v2451_v6  ;;  %v1176_v6 = vmov 1.0  }
  0xe8   : > { %518 = vmatpush2.msra.mxu1 %v2452_v18  ;;  %v2461_v18 = vld [vmem:[#allocation62_spill] sm:$0xff] }
  0xe9   : > { %519 = vmatprep.subr.mxu1 %v2453_v22  ;;  %v2462_v22 = vld [vmem:[#allocation60_spill] sm:$0xff] }
  0xea   : > { %520 = vmatpush2.msra.mxu1 %v2454_v50  ;;  %v2463_v50 = vld [vmem:[#allocation59_spill] sm:$0xff] }
  0xeb   : > { %521 = vmatprep.subr.mxu1 %v2455_v57  ;;  %v2464_v57 = vld [vmem:[#allocation58_spill] sm:$0xff] }
  0xec   : > { %522 = vmatpush2.msra.mxu1 %v2456_v37  ;;  %v2465_v37 = vld [vmem:[#allocation57_spill] sm:$0xff] }
  0xed   : > { %523 = vmatprep.subr.mxu1 %v2457_v0  ;;  %v2466_v0 = vld [vmem:[#allocation56_spill] sm:$0xff] }
  0xee   : > { %524 = vmatpush2.msra.mxu1 %v2458_v2  ;;  %v2467_v2 = vld [vmem:[#allocation55_spill] sm:$0xff] }
  0xef   : > { %648 = vmatprep.subr.mxu1 %v2459_v3  ;;  %v2468_v3 = vld [vmem:[#allocation54_spill] sm:$0xff] }
 0x12b   : > { %v366_v4 = vpop.permute.xlu0 %365 }
 0x12c   : > { %vm367_vm2 = vcmp.eq.s32.totalorder %v2460_v5, %v366_v4  ;;  %v2470_v4 = vld [vmem:[#allocation51_spill] sm:$0xff]  ;;  %v2471_v5 = vld [vmem:[#allocation50_spill] sm:$0xff] }
 0x12d   : > { %921 = vmatmul.mubr.msk.f32.vlgmr.msra.gmra.mxu0 %vm367_vm2, %v1176_v6  ;;  %v2472_v6 = vld [vmem:[#allocation49_spill] sm:$0xff] }
 0x12e   : > { %533 = vmatpush1.msra.mxu0 %v2461_v18  ;;  %v2473_v18 = vld [vmem:[#allocation48_spill] sm:$0xff]  ;;  %596 = vmatprep.mubr.f32.mxu0 %v1156_v1 }
 0x12f   : > { %534 = vmatprep.subr.mxu0 %v2462_v22  ;;  %v2474_v22 = vld [vmem:[#allocation47_spill] sm:$0xff]  ;;  %v2532_v1 = vld [vmem:[#allocation180_spill] sm:$0xff] }
 0x130   : > { %535 = vmatpush1.msra.mxu0 %v2463_v50  ;;  %v2475_v50 = vld [vmem:[#allocation46_spill] sm:$0xff] }
 0x131   : > { %536 = vmatprep.subr.mxu0 %v2464_v57  ;;  %v2476_v57 = vld [vmem:[#allocation45_spill] sm:$0xff] }
 0x132   : > { %537 = vmatpush1.msra.mxu0 %v2465_v37  ;;  %v2477_v37 = vld [vmem:[#allocation44_spill] sm:$0xff] }
 0x133   : > { %538 = vmatprep.subr.mxu0 %v2466_v0  ;;  %v2478_v0 = vld [vmem:[#allocation43_spill] sm:$0xff] }
 0x134   : > { %539 = vmatpush1.msra.mxu0 %v2467_v2  ;;  %v2479_v2 = vld [vmem:[#allocation42_spill] sm:$0xff] }
 0x135   : > { %540 = vmatprep.subr.mxu0 %v2468_v3  ;;  %v2481_v3 = vld [vmem:[#allocation40_spill] sm:$0xff] }
 0x136   : > { %541 = vmatpush1.msra.mxu0 %v2469_v7  ;;  %v2480_v7 = vld [vmem:[#allocation41_spill] sm:$0xff] }
 0x137   : > { %542 = vmatprep.subr.mxu0 %v2470_v4  ;;  %v2482_v4 = vld [vmem:[#allocation39_spill] sm:$0xff] }
 0x138   : > { %543 = vmatpush1.msra.mxu0 %v2471_v5  ;;  %v2483_v5 = vld [vmem:[#allocation38_spill] sm:$0xff] }
 0x139   : > { %544 = vmatprep.subr.mxu0 %v2472_v6  ;;  %v2484_v6 = vld [vmem:[#allocation37_spill] sm:$0xff] }
 0x13a   : > { %545 = vmatpush1.msra.mxu0 %v2473_v18  ;;  %v2485_v18 = vld [vmem:[#allocation36_spill] sm:$0xff] }
 0x13b   : > { %546 = vmatprep.subr.mxu0 %v2474_v22  ;;  %v2486_v22 = vld [vmem:[#allocation35_spill] sm:$0xff] }
 0x13c   : > { %547 = vmatpush1.msra.mxu0 %v2475_v50  ;;  %v2487_v50 = vld [vmem:[#allocation34_spill] sm:$0xff] }
 0x13d   : > { %548 = vmatprep.subr.mxu0 %v2476_v57  ;;  %v2488_v57 = vld [vmem:[#allocation33_spill] sm:$0xff] }
 0x13e   : > { %549 = vmatpush1.msra.mxu0 %v2477_v37  ;;  %v2489_v37 = vld [vmem:[#allocation32_spill] sm:$0xff] }
 0x13f   : > { %550 = vmatprep.subr.mxu0 %v2478_v0  ;;  %v2490_v0 = vld [vmem:[#allocation31_spill] sm:$0xff] }
 0x140   : > { %551 = vmatpush1.msra.mxu0 %v2479_v2  ;;  %v2491_v2 = vld [vmem:[#allocation30_spill] sm:$0xff] }
 0x141   : > { %552 = vmatprep.subr.mxu0 %v2480_v7  ;;  %v2492_v7 = vld [vmem:[#allocation123_spill] sm:$0xff] }
 0x142   : > { %553 = vmatpush1.msra.mxu0 %v2481_v3  ;;  %v2493_v3 = vld [vmem:[#allocation122_spill] sm:$0xff] }
 0x143   : > { %554 = vmatprep.subr.mxu0 %v2482_v4  ;;  %v2494_v4 = vld [vmem:[#allocation121_spill] sm:$0xff] }
 0x144   : > { %555 = vmatpush1.msra.mxu0 %v2483_v5  ;;  %v2495_v5 = vld [vmem:[#allocation120_spill] sm:$0xff] }
 0x145   : > { %556 = vmatprep.subr.mxu0 %v2484_v6  ;;  %v2496_v6 = vld [vmem:[#allocation118_spill] sm:$0xff] }
 0x146   : > { %557 = vmatpush1.msra.mxu0 %v2485_v18  ;;  %v2497_v18 = vld [vmem:[#allocation117_spill] sm:$0xff] }
 0x147   : > { %558 = vmatprep.subr.mxu0 %v2486_v22  ;;  %v2498_v22 = vld [vmem:[#allocation114_spill] sm:$0xff] }
 0x148   : > { %559 = vmatpush1.msra.mxu0 %v2487_v50  ;;  %v2499_v50 = vld [vmem:[#allocation113_spill] sm:$0xff] }
 0x149   : > { %560 = vmatprep.subr.mxu0 %v2488_v57  ;;  %v2500_v57 = vld [vmem:[#allocation110_spill] sm:$0xff] }
 0x14a   : > { %561 = vmatpush1.msra.mxu0 %v2489_v37  ;;  %v2501_v37 = vld [vmem:[#allocation109_spill] sm:$0xff] }
 0x14b   : > { %562 = vmatprep.subr.mxu0 %v2490_v0  ;;  %v2502_v0 = vld [vmem:[#allocation106_spill] sm:$0xff] }
 0x14c   : > { %563 = vmatpush1.msra.mxu0 %v2491_v2  ;;  %v2503_v2 = vld [vmem:[#allocation105_spill] sm:$0xff] }
 0x14d   : > { %564 = vmatprep.subr.mxu0 %v2492_v7  ;;  %v2504_v7 = vld [vmem:[#allocation102_spill] sm:$0xff] }
 0x14e   : > { %565 = vmatpush2.msra.mxu0 %v2493_v3  ;;  %v2505_v3 = vld [vmem:[#allocation101_spill] sm:$0xff] }
 0x14f   : > { %566 = vmatprep.subr.mxu0 %v2494_v4  ;;  %v2506_v4 = vld [vmem:[#allocation98_spill] sm:$0xff] }
 0x150   : > { %567 = vmatpush2.msra.mxu0 %v2495_v5  ;;  %v2507_v5 = vld [vmem:[#allocation97_spill] sm:$0xff] }
 0x151   : > { %568 = vmatprep.subr.mxu0 %v2496_v6  ;;  %v2508_v6 = vld [vmem:[#allocation94_spill] sm:$0xff] }
 0x152   : > { %569 = vmatpush2.msra.mxu0 %v2497_v18  ;;  %v2509_v18 = vld [vmem:[#allocation93_spill] sm:$0xff] }
 0x153   : > { %570 = vmatprep.subr.mxu0 %v2498_v22  ;;  %v2510_v22 = vld [vmem:[#allocation90_spill] sm:$0xff] }
 0x154   : > { %571 = vmatpush2.msra.mxu0 %v2499_v50  ;;  %v2511_v50 = vld [vmem:[#allocation89_spill] sm:$0xff] }
 0x155   : > { %572 = vmatprep.subr.mxu0 %v2500_v57  ;;  %v2512_v57 = vld [vmem:[#allocation86_spill] sm:$0xff] }
 0x156   : > { %573 = vmatpush2.msra.mxu0 %v2501_v37  ;;  %v2513_v37 = vld [vmem:[#allocation85_spill] sm:$0xff] }
 0x157   : > { %574 = vmatprep.subr.mxu0 %v2502_v0  ;;  %v2514_v0 = vld [vmem:[#allocation82_spill] sm:$0xff] }
 0x158   : > { %575 = vmatpush2.msra.mxu0 %v2503_v2  ;;  %v2515_v2 = vld [vmem:[#allocation81_spill] sm:$0xff] }
 0x159   : > { %576 = vmatprep.subr.mxu0 %v2504_v7  ;;  %v2516_v7 = vld [vmem:[#allocation78_spill] sm:$0xff] }
 0x15a   : > { %577 = vmatpush2.msra.mxu0 %v2505_v3  ;;  %v2517_v3 = vld [vmem:[#allocation77_spill] sm:$0xff] }
 0x15b   : > { %578 = vmatprep.subr.mxu0 %v2506_v4  ;;  %v2518_v4 = vld [vmem:[#allocation74_spill] sm:$0xff] }
 0x15c   : > { %579 = vmatpush2.msra.mxu0 %v2507_v5  ;;  %v2519_v5 = vld [vmem:[#allocation73_spill] sm:$0xff] }
 0x15d   : > { %580 = vmatprep.subr.mxu0 %v2508_v6  ;;  %v2520_v6 = vld [vmem:[#allocation70_spill] sm:$0xff] }
 0x15e   : > { %581 = vmatpush2.msra.mxu0 %v2509_v18  ;;  %v2521_v18 = vld [vmem:[#allocation69_spill] sm:$0xff] }
 0x15f   : > { %582 = vmatprep.subr.mxu0 %v2510_v22  ;;  %v2522_v22 = vld [vmem:[#allocation66_spill] sm:$0xff] }
 0x160   : > { %583 = vmatpush2.msra.mxu0 %v2511_v50  ;;  %v2523_v50 = vld [vmem:[#allocation65_spill] sm:$0xff] }
 0x161   : > { %584 = vmatprep.subr.mxu0 %v2512_v57  ;;  %v2524_v57 = vld [vmem:[#allocation188_spill] sm:$0xff] }
 0x162   : > { %585 = vmatpush2.msra.mxu0 %v2513_v37 }
 0x163   : > { %586 = vmatprep.subr.mxu0 %v2514_v0 }
 0x164   : > { %587 = vmatpush2.msra.mxu0 %v2515_v2  ;;  %v2525_v2 = vld [vmem:[#allocation185_spill] sm:$0xff] }
 0x165   : > { %588 = vmatprep.subr.mxu0 %v2516_v7  ;;  %v2526_v7 = vld [vmem:[#allocation187_spill] sm:$0xff] }
 0x166   : > { %589 = vmatpush2.msra.mxu0 %v2517_v3  ;;  %v2527_v3 = vld [vmem:[#allocation182_spill] sm:$0xff] }
 0x167   : > { %590 = vmatprep.subr.mxu0 %v2518_v4  ;;  %v2528_v4 = vld [vmem:[#allocation184_spill] sm:$0xff] }
 0x168   : > { %591 = vmatpush2.msra.mxu0 %v2519_v5  ;;  %v2529_v5 = vld [vmem:[#allocation181_spill] sm:$0xff] }
 0x169   : > { %592 = vmatprep.subr.mxu0 %v2520_v6  ;;  %v2530_v6 = vld [vmem:[#allocation183_spill] sm:$0xff] }
 0x16a   : > { %593 = vmatpush2.msra.mxu0 %v2521_v18  ;;  %v2531_v18 = vld [vmem:[#allocation178_spill] sm:$0xff] }
 0x16b   : > { %594 = vmatprep.subr.mxu0 %v2522_v22  ;;  %v2533_v22 = vld [vmem:[#allocation177_spill] sm:$0xff] }
 0x16c   : > { %595 = vmatpush2.msra.mxu0 %v2523_v50  ;;  %v2534_v50 = vld [vmem:[#allocation179_spill] sm:$0xff] }
 0x16d   : > { %719 = vmatprep.subr.mxu0 %v2524_v57  ;;  %v2535_v57 = vld [vmem:[#allocation174_spill] sm:$0xff] }
 0x1ed   : > { %v436_v37 = vpop.f32.mrf.mxu0 }
 0x1ee   : > { %526 = vmatmul.mubr.f32.vlgmr.msra.gmra.mxu1 %v436_v37  ;;  %597 = vmatmul.mubr.f32.vlgmr.msra.gmra.mxu0 %v436_v37  ;;  %v2536_v37 = vld [vmem:[#allocation176_spill] sm:$0xff] }
 0x1ef   : > { %v922_v0 = vpop.f32.mrf.mxu0  ;;  %649 = vmatpush1.msra.mxu1 %v2525_v2  ;;  %720 = vmatpush1.msra.mxu0 %v2526_v7  ;;  %v2538_v2 = vld [vmem:[#allocation175_spill] sm:$0xff]  ;;  %v2539_v7 = vld [vmem:[#allocation170_spill] sm:$0xff] }
 0x1f0   : > { %650 = vmatprep.subr.mxu1 %v2527_v3  ;;  %721 = vmatprep.subr.mxu0 %v2528_v4  ;;  %v2537_v0 = vld [vmem:[#allocation173_spill] sm:$0xff]  ;;  %v2540_v3 = vld [vmem:[#allocation172_spill] sm:$0xff] }
 0x1f1   : > { %651 = vmatpush1.msra.mxu1 %v2529_v5  ;;  %722 = vmatpush1.msra.mxu0 %v2530_v6  ;;  %v2541_v4 = vld [vmem:[#allocation169_spill] sm:$0xff]  ;;  %v2542_v5 = vld [vmem:[#allocation171_spill] sm:$0xff]  ;;  %v2543_v6 = vld [vmem:[#allocation166_spill] sm:$0xff] }
 0x1f2   : > { %652 = vmatprep.subr.mxu1 %v2531_v18  ;;  %723 = vmatprep.subr.mxu0 %v2532_v1  ;;  %v2544_v18 = vld [vmem:[#allocation168_spill] sm:$0xff]  ;;  %v2545_v1 = vld [vmem:[#allocation165_spill] sm:$0xff] }
 0x1f3   : > { %653 = vmatpush1.msra.mxu1 %v2533_v22  ;;  %724 = vmatpush1.msra.mxu0 %v2534_v50  ;;  %v2546_v22 = vld [vmem:[#allocation167_spill] sm:$0xff]  ;;  %v2547_v50 = vld [vmem:[#allocation162_spill] sm:$0xff] }
 0x1f4   : > { %654 = vmatprep.subr.mxu1 %v2535_v57  ;;  %725 = vmatprep.subr.mxu0 %v2536_v37  ;;  %v2548_v57 = vld [vmem:[#allocation164_spill] sm:$0xff]  ;;  %v2549_v37 = vld [vmem:[#allocation161_spill] sm:$0xff] }
 0x1f5   : > { %655 = vmatpush1.msra.mxu1 %v2537_v0  ;;  %726 = vmatpush1.msra.mxu0 %v2538_v2  ;;  %v2550_v0 = vld [vmem:[#allocation163_spill] sm:$0xff]  ;;  %v2551_v2 = vld [vmem:[#allocation158_spill] sm:$0xff] }
 0x1f6   : > { %656 = vmatprep.subr.mxu1 %v2539_v7  ;;  %727 = vmatprep.subr.mxu0 %v2540_v3  ;;  %v2552_v7 = vld [vmem:[#allocation160_spill] sm:$0xff]  ;;  %v2553_v3 = vld [vmem:[#allocation157_spill] sm:$0xff] }
 0x1f7   : > { %657 = vmatpush1.msra.mxu1 %v2541_v4  ;;  %728 = vmatpush1.msra.mxu0 %v2542_v5  ;;  %v2554_v4 = vld [vmem:[#allocation159_spill] sm:$0xff]  ;;  %v2555_v5 = vld [vmem:[#allocation154_spill] sm:$0xff] }
 0x1f8   : > { %658 = vmatprep.subr.mxu1 %v2543_v6  ;;  %729 = vmatprep.subr.mxu0 %v2544_v18  ;;  %v2556_v6 = vld [vmem:[#allocation156_spill] sm:$0xff]  ;;  %v2557_v18 = vld [vmem:[#allocation153_spill] sm:$0xff] }
 0x1f9   : > { %659 = vmatpush1.msra.mxu1 %v2545_v1  ;;  %730 = vmatpush1.msra.mxu0 %v2546_v22  ;;  %v2558_v1 = vld [vmem:[#allocation155_spill] sm:$0xff]  ;;  %v2559_v22 = vld [vmem:[#allocation150_spill] sm:$0xff] }
 0x1fa   : > { %660 = vmatprep.subr.mxu1 %v2547_v50  ;;  %731 = vmatprep.subr.mxu0 %v2548_v57  ;;  %v2560_v50 = vld [vmem:[#allocation152_spill] sm:$0xff]  ;;  %v2561_v57 = vld [vmem:[#allocation149_spill] sm:$0xff] }
 0x1fb   : > { %661 = vmatpush1.msra.mxu1 %v2549_v37  ;;  %732 = vmatpush1.msra.mxu0 %v2550_v0  ;;  %v2562_v37 = vld [vmem:[#allocation151_spill] sm:$0xff]  ;;  %v2563_v0 = vld [vmem:[#allocation146_spill] sm:$0xff] }
 0x1fc   : > { %662 = vmatprep.subr.mxu1 %v2551_v2  ;;  %733 = vmatprep.subr.mxu0 %v2552_v7  ;;  %v2564_v2 = vld [vmem:[#allocation148_spill] sm:$0xff]  ;;  %v2565_v7 = vld [vmem:[#allocation145_spill] sm:$0xff] }
 0x1fd   : > { %663 = vmatpush1.msra.mxu1 %v2553_v3  ;;  %734 = vmatpush1.msra.mxu0 %v2554_v4  ;;  %v2566_v3 = vld [vmem:[#allocation147_spill] sm:$0xff]  ;;  %v2567_v4 = vld [vmem:[#allocation142_spill] sm:$0xff] }
 0x1fe   : > { %664 = vmatprep.subr.mxu1 %v2555_v5  ;;  %735 = vmatprep.subr.mxu0 %v2556_v6  ;;  %v2568_v5 = vld [vmem:[#allocation144_spill] sm:$0xff]  ;;  %v2569_v6 = vld [vmem:[#allocation141_spill] sm:$0xff] }
 0x1ff   : > { %665 = vmatpush1.msra.mxu1 %v2557_v18  ;;  %736 = vmatpush1.msra.mxu0 %v2558_v1  ;;  %v2570_v18 = vld [vmem:[#allocation143_spill] sm:$0xff]  ;;  %v2571_v1 = vld [vmem:[#allocation138_spill] sm:$0xff] }
 0x200   : > { %666 = vmatprep.subr.mxu1 %v2559_v22  ;;  %737 = vmatprep.subr.mxu0 %v2560_v50  ;;  %v2572_v22 = vld [vmem:[#allocation140_spill] sm:$0xff]  ;;  %v2573_v50 = vld [vmem:[#allocation137_spill] sm:$0xff] }
 0x201   : > { %667 = vmatpush1.msra.mxu1 %v2561_v57  ;;  %738 = vmatpush1.msra.mxu0 %v2562_v37  ;;  %v2574_v57 = vld [vmem:[#allocation139_spill] sm:$0xff]  ;;  %v2575_v37 = vld [vmem:[#allocation134_spill] sm:$0xff] }
 0x202   : > { %668 = vmatprep.subr.mxu1 %v2563_v0  ;;  %739 = vmatprep.subr.mxu0 %v2564_v2  ;;  %v2576_v0 = vld [vmem:[#allocation136_spill] sm:$0xff]  ;;  %v2577_v2 = vld [vmem:[#allocation133_spill] sm:$0xff] }
 0x203   : > { %669 = vmatpush1.msra.mxu1 %v2565_v7  ;;  %740 = vmatpush1.msra.mxu0 %v2566_v3  ;;  %v2578_v7 = vld [vmem:[#allocation135_spill] sm:$0xff]  ;;  %v2579_v3 = vld [vmem:[#allocation130_spill] sm:$0xff] }
 0x204   : > { %670 = vmatprep.subr.mxu1 %v2567_v4  ;;  %741 = vmatprep.subr.mxu0 %v2568_v5  ;;  %v2580_v4 = vld [vmem:[#allocation132_spill] sm:$0xff]  ;;  %v2581_v5 = vld [vmem:[#allocation129_spill] sm:$0xff] }
 0x205   : > { %671 = vmatpush1.msra.mxu1 %v2569_v6  ;;  %742 = vmatpush1.msra.mxu0 %v2570_v18  ;;  %v2582_v6 = vld [vmem:[#allocation131_spill] sm:$0xff]  ;;  %v2583_v18 = vld [vmem:[#allocation126_spill] sm:$0xff] }
 0x206   : > { %672 = vmatprep.subr.mxu1 %v2571_v1  ;;  %743 = vmatprep.subr.mxu0 %v2572_v22  ;;  %v2584_v1 = vld [vmem:[#allocation128_spill] sm:$0xff]  ;;  %v2585_v22 = vld [vmem:[#allocation125_spill] sm:$0xff] }
 0x207   : > { %673 = vmatpush1.msra.mxu1 %v2573_v50  ;;  %744 = vmatpush1.msra.mxu0 %v2574_v57  ;;  %v2586_v50 = vld [vmem:[#allocation127_spill] sm:$0xff]  ;;  %v2587_v57 = vld [vmem:[#allocation246_spill] sm:$0xff] }
 0x208   : > { %674 = vmatprep.subr.mxu1 %v2575_v37  ;;  %745 = vmatprep.subr.mxu0 %v2576_v0  ;;  %v2588_v37 = vld [vmem:[#allocation248_spill] sm:$0xff]  ;;  %v2589_v0 = vld [vmem:[#allocation245_spill] sm:$0xff] }
 0x209   : > { %675 = vmatpush1.msra.mxu1 %v2577_v2  ;;  %746 = vmatpush1.msra.mxu0 %v2578_v7  ;;  %v2590_v2 = vld [vmem:[#allocation247_spill] sm:$0xff]  ;;  %v2591_v7 = vld [vmem:[#allocation242_spill] sm:$0xff] }
 0x20a   : > { %676 = vmatprep.subr.mxu1 %v2579_v3  ;;  %747 = vmatprep.subr.mxu0 %v2580_v4  ;;  %v2592_v3 = vld [vmem:[#allocation244_spill] sm:$0xff]  ;;  %v2593_v4 = vld [vmem:[#allocation241_spill] sm:$0xff] }
 0x20b   : > { %677 = vmatpush1.msra.mxu1 %v2581_v5  ;;  %748 = vmatpush1.msra.mxu0 %v2582_v6  ;;  %v2594_v5 = vld [vmem:[#allocation243_spill] sm:$0xff]  ;;  %v2595_v6 = vld [vmem:[#allocation238_spill] sm:$0xff] }
 0x20c   : > { %678 = vmatprep.subr.mxu1 %v2583_v18  ;;  %749 = vmatprep.subr.mxu0 %v2584_v1  ;;  %v2596_v18 = vld [vmem:[#allocation240_spill] sm:$0xff]  ;;  %v2597_v1 = vld [vmem:[#allocation237_spill] sm:$0xff] }
 0x20d   : > { %679 = vmatpush1.msra.mxu1 %v2585_v22  ;;  %750 = vmatpush1.msra.mxu0 %v2586_v50  ;;  %v2598_v22 = vld [vmem:[#allocation239_spill] sm:$0xff]  ;;  %v2599_v50 = vld [vmem:[#allocation234_spill] sm:$0xff] }
 0x20e   : > { %680 = vmatprep.subr.mxu1 %v1783_v38  ;;  %751 = vmatprep.subr.mxu0 %v1787_v46 }
 0x20f   : > { %681 = vmatpush2.msra.mxu1 %v1781_v58  ;;  %752 = vmatpush2.msra.mxu0 %v1785_v21 }
 0x210   : > { %682 = vmatprep.subr.mxu1 %v2587_v57  ;;  %753 = vmatprep.subr.mxu0 %v2588_v37  ;;  %v2600_v57 = vld [vmem:[#allocation236_spill] sm:$0xff]  ;;  %v2601_v37 = vld [vmem:[#allocation233_spill] sm:$0xff] }
 0x211   : > { %683 = vmatpush2.msra.mxu1 %v2589_v0  ;;  %754 = vmatpush2.msra.mxu0 %v2590_v2  ;;  %v2602_v0 = vld [vmem:[#allocation235_spill] sm:$0xff]  ;;  %v2603_v2 = vld [vmem:[#allocation230_spill] sm:$0xff] }
 0x212   : > { %684 = vmatprep.subr.mxu1 %v2591_v7  ;;  %755 = vmatprep.subr.mxu0 %v2592_v3  ;;  %v2604_v7 = vld [vmem:[#allocation232_spill] sm:$0xff]  ;;  %v2605_v3 = vld [vmem:[#allocation229_spill] sm:$0xff] }
 0x213   : > { %685 = vmatpush2.msra.mxu1 %v2593_v4  ;;  %756 = vmatpush2.msra.mxu0 %v2594_v5  ;;  %v2606_v4 = vld [vmem:[#allocation231_spill] sm:$0xff]  ;;  %v2607_v5 = vld [vmem:[#allocation226_spill] sm:$0xff] }
 0x214   : > { %686 = vmatprep.subr.mxu1 %v2595_v6  ;;  %757 = vmatprep.subr.mxu0 %v2596_v18  ;;  %v2608_v6 = vld [vmem:[#allocation228_spill] sm:$0xff]  ;;  %v2609_v18 = vld [vmem:[#allocation225_spill] sm:$0xff] }
 0x215   : > { %687 = vmatpush2.msra.mxu1 %v2597_v1  ;;  %758 = vmatpush2.msra.mxu0 %v2598_v22  ;;  %v2610_v1 = vld [vmem:[#allocation227_spill] sm:$0xff]  ;;  %v2611_v22 = vld [vmem:[#allocation222_spill] sm:$0xff] }
 0x216   : > { %688 = vmatprep.subr.mxu1 %v2599_v50  ;;  %759 = vmatprep.subr.mxu0 %v2600_v57  ;;  %v2612_v50 = vld [vmem:[#allocation224_spill] sm:$0xff]  ;;  %v2613_v57 = vld [vmem:[#allocation221_spill] sm:$0xff] }
 0x217   : > { %689 = vmatpush2.msra.mxu1 %v2601_v37  ;;  %760 = vmatpush2.msra.mxu0 %v2602_v0  ;;  %v2614_v37 = vld [vmem:[#allocation223_spill] sm:$0xff]  ;;  %v2615_v0 = vld [vmem:[#allocation218_spill] sm:$0xff] }
 0x218   : > { %690 = vmatprep.subr.mxu1 %v2603_v2  ;;  %761 = vmatprep.subr.mxu0 %v2604_v7  ;;  %v2616_v2 = vld [vmem:[#allocation220_spill] sm:$0xff]  ;;  %v2617_v7 = vld [vmem:[#allocation217_spill] sm:$0xff] }
 0x219   : > { %691 = vmatpush2.msra.mxu1 %v2605_v3  ;;  %762 = vmatpush2.msra.mxu0 %v2606_v4  ;;  %v2618_v3 = vld [vmem:[#allocation219_spill] sm:$0xff]  ;;  %v2619_v4 = vld [vmem:[#allocation214_spill] sm:$0xff] }
 0x21a   : > { %692 = vmatprep.subr.mxu1 %v2607_v5  ;;  %763 = vmatprep.subr.mxu0 %v2608_v6  ;;  %v2620_v5 = vld [vmem:[#allocation216_spill] sm:$0xff]  ;;  %v2621_v6 = vld [vmem:[#allocation213_spill] sm:$0xff] }
 0x21b   : > { %693 = vmatpush2.msra.mxu1 %v2609_v18  ;;  %764 = vmatpush2.msra.mxu0 %v2610_v1  ;;  %v2622_v18 = vld [vmem:[#allocation215_spill] sm:$0xff]  ;;  %v2623_v1 = vld [vmem:[#allocation210_spill] sm:$0xff] }
 0x21c   : > { %694 = vmatprep.subr.mxu1 %v2611_v22  ;;  %765 = vmatprep.subr.mxu0 %v2612_v50  ;;  %v2624_v22 = vld [vmem:[#allocation212_spill] sm:$0xff]  ;;  %v2625_v50 = vld [vmem:[#allocation209_spill] sm:$0xff] }
 0x21d   : > { %695 = vmatpush2.msra.mxu1 %v2613_v57  ;;  %766 = vmatpush2.msra.mxu0 %v2614_v37  ;;  %v2626_v57 = vld [vmem:[#allocation211_spill] sm:$0xff]  ;;  %v2627_v37 = vld [vmem:[#allocation206_spill] sm:$0xff] }
 0x21e   : > { %696 = vmatprep.subr.mxu1 %v2615_v0  ;;  %767 = vmatprep.subr.mxu0 %v2616_v2  ;;  %v2628_v0 = vld [vmem:[#allocation208_spill] sm:$0xff]  ;;  %v2629_v2 = vld [vmem:[#allocation205_spill] sm:$0xff] }
 0x21f   : > { %697 = vmatpush2.msra.mxu1 %v2617_v7  ;;  %768 = vmatpush2.msra.mxu0 %v2618_v3  ;;  %v2630_v7 = vld [vmem:[#allocation207_spill] sm:$0xff]  ;;  %v2631_v3 = vld [vmem:[#allocation202_spill] sm:$0xff] }
 0x220   : > { %698 = vmatprep.subr.mxu1 %v2619_v4  ;;  %769 = vmatprep.subr.mxu0 %v2620_v5  ;;  %v2632_v4 = vld [vmem:[#allocation204_spill] sm:$0xff]  ;;  %v2633_v5 = vld [vmem:[#allocation201_spill] sm:$0xff] }
 0x221   : > { %699 = vmatpush2.msra.mxu1 %v2621_v6  ;;  %770 = vmatpush2.msra.mxu0 %v2622_v18  ;;  %v2634_v6 = vld [vmem:[#allocation203_spill] sm:$0xff]  ;;  %v2635_v18 = vld [vmem:[#allocation198_spill] sm:$0xff] }
 0x222   : > { %700 = vmatprep.subr.mxu1 %v2623_v1  ;;  %771 = vmatprep.subr.mxu0 %v2624_v22  ;;  %v2636_v1 = vld [vmem:[#allocation200_spill] sm:$0xff]  ;;  %v2637_v22 = vld [vmem:[#allocation197_spill] sm:$0xff] }
 0x223   : > { %701 = vmatpush2.msra.mxu1 %v2625_v50  ;;  %772 = vmatpush2.msra.mxu0 %v2626_v57  ;;  %v2638_v50 = vld [vmem:[#allocation199_spill] sm:$0xff]  ;;  %v2639_v57 = vld [vmem:[#allocation194_spill] sm:$0xff] }
 0x224   : > { %702 = vmatprep.subr.mxu1 %v2627_v37  ;;  %773 = vmatprep.subr.mxu0 %v2628_v0  ;;  %v2640_v37 = vld [vmem:[#allocation196_spill] sm:$0xff]  ;;  %v2641_v0 = vld [vmem:[#allocation193_spill] sm:$0xff] }
 0x225   : > { %703 = vmatpush2.msra.mxu1 %v2629_v2  ;;  %774 = vmatpush2.msra.mxu0 %v2630_v7  ;;  %v2642_v2 = vld [vmem:[#allocation195_spill] sm:$0xff]  ;;  %v2643_v7 = vld [vmem:[#allocation190_spill] sm:$0xff] }
 0x226   : > { %704 = vmatprep.subr.mxu1 %v2631_v3  ;;  %775 = vmatprep.subr.mxu0 %v2632_v4  ;;  %v2644_v3 = vld [vmem:[#allocation192_spill] sm:$0xff]  ;;  %v2645_v4 = vld [vmem:[#allocation189_spill] sm:$0xff] }
 0x227   : > { %705 = vmatpush2.msra.mxu1 %v2633_v5  ;;  %776 = vmatpush2.msra.mxu0 %v2634_v6  ;;  %v2646_v5 = vld [vmem:[#allocation191_spill] sm:$0xff]  ;;  %v2647_v6 = vlaneseq }
 0x228   : > { %706 = vmatprep.subr.mxu1 %v2635_v18  ;;  %777 = vmatprep.subr.mxu0 %v2636_v1 }
 0x229   : > { %707 = vmatpush2.msra.mxu1 %v2637_v22  ;;  %778 = vmatpush2.msra.mxu0 %v2638_v50  ;;  %v442_v18 = vshrl.u32 %v2647_v6, 7  ;;  %v2648_v50 = vld [vmem:[#allocation124_spill] sm:$0xff] }
 0x22a   : > { %708 = vmatprep.subr.mxu1 %v2639_v57  ;;  %779 = vmatprep.subr.mxu0 %v2640_v37 }
 0x22b   : > { %709 = vmatpush2.msra.mxu1 %v2641_v0  ;;  %780 = vmatpush2.msra.mxu0 %v2642_v2  ;;  %v443_v1 = vsub.s32 0, %v442_v18  ;;  %v447_v22 = vsub.s32 1, %v442_v18  ;;  %v451_v6 = vsub.s32 2, %v442_v18 }
 0x22c   : > { %710 = vmatprep.subr.mxu1 %v2643_v7  ;;  %781 = vmatprep.subr.mxu0 %v2644_v3 }
 0x22d   : > { %711 = vmatpush2.msra.mxu1 %v2645_v4  ;;  %782 = vmatpush2.msra.mxu0 %v2646_v5  ;;  %v444_v57 = vrot.slane %v2648_v50, %v443_v1  ;;  %v448_v37 = vrot.slane %v2648_v50, %v447_v22  ;;  %v455_v4 = vsub.s32 3, %v442_v18  ;;  %v452_v12 = vrot.slane %v2648_v50, %v451_v6 }
 0x22e   : > { %712 = vmatprep.mubr.f32.mxu1 %v1148_v62  ;;  %783 = vmatprep.mubr.f32.mxu0 %v1148_v62 }
 0x22f   : > { %v456_v62 = vrot.slane %v2648_v50, %v455_v4 }
 0x2ae   : > { %v527_v0 = vpop.f32.mrf.mxu1  ;;  %v598_v5 = vpop.f32.mrf.mxu0 }
 0x2af   : > { %v528_v2 = vadd.f32 %v527_v0, %v444_v57  ;;  %v599_v15 = vadd.f32 %v598_v5, %v452_v12 }
 0x2b0   : > { %v529_v7 = vpop.f32.mrf.mxu1  ;;  %v600_v10 = vpop.f32.mrf.mxu0 }
 0x2b1   : > { %v865_v3 = vmul.f32 -1.442695, %v528_v2  ;;  %v530_v8 = vadd.f32 %v529_v7, %v448_v37  ;;  %v601_v11 = vadd.f32 %v600_v10, %v456_v62 }
 0x2b3   : > { %992 = vpow2.f32 %v865_v3  ;;  %v866_v9 = vmul.f32 -1.442695, %v530_v8  ;;  %v867_v13 = vmul.f32 -1.442695, %v601_v11 }
 0x2b5   : > { %994 = vpow2.f32 %v866_v9 }
 0x2b6   : > { %996 = vpow2.f32 %v867_v13  ;;  %v631_v13 = vrot.slane %v1792_v61, %v443_v1 }
 0x2c0   : > { %v993_v14 = vpop.eup %992 }
 0x2c1   : > { %v606_v16 = vadd.f32 1.0, %v993_v14 }
 0x2c2   : > { %v995_v57 = vpop.eup %994 }
 0x2c3   : > { %998 = vrcp.f32 %v606_v16  ;;  %v612_v37 = vadd.f32 1.0, %v995_v57  ;;  %v997_v0 = vpop.eup %996 }
 0x2c4   : > { %1000 = vtanh.f32 %v599_v15  ;;  %v619_v7 = vadd.f32 1.0, %v997_v0  ;;  %v635_v15 = vrot.slane %v1792_v61, %v447_v22 }
 0x2c5   : > { %1002 = vrcp.f32 %v612_v37 }
 0x2c6   : > { %1004 = vrcp.f32 %v619_v7  ;;  %v639_v7 = vrot.slane %v1792_v61, %v451_v6 }
 0x2d0   : > { %v999_v8 = vpop.eup %998 }
 0x2d1   : > { %v1001_v9 = vpop.eup %1000 }
 0x2d2   : > { %v1003_v2 = vpop.eup %1002  ;;  %v623_v3 = vmul.f32 %v1001_v9, %v999_v8  ;;  %v643_v8 = vrot.slane %v1792_v61, %v455_v4 }
 0x2d3   : > { %v622_v10 = vmul.f32 %v1152_v30, %v1003_v2  ;;  %v1005_v11 = vpop.eup %1004 }
 0x2d5   : > { %v624_v30 = vadd.f32 %v623_v3, %v622_v10  }
 0x2d7   : > { %1006 = vtanh.f32 %v624_v30 }
 0x2e4   : > { %v1007_v12 = vpop.eup %1006 }
 0x2e5   : > { %v626_v14 = vmul.f32 %v1007_v12, %v1005_v11  }
 0x2e7   : > { %713 = vmatmul.mubr.f32.vlgmr.msra.gmra.mxu1 %v626_v14  ;;  %784 = vmatmul.mubr.f32.vlgmr.msra.gmra.mxu0 %v626_v14 }
 0x3a7   : > { %v714_v16 = vpop.f32.mrf.mxu1  ;;  %v785_v37 = vpop.f32.mrf.mxu0 }
 0x3a8   : > { %v715_v18 = vadd.f32 %v714_v16, %v631_v13  ;;  %v786_v1 = vadd.f32 %v785_v37, %v639_v7  ;;  %v819_v37 = vpop.permute.xlu0 %818 }
 0x3a9   : > { %v716_v5 = vpop.f32.mrf.mxu1  ;;  %v787_v9 = vpop.f32.mrf.mxu0  ;;  %vm820_vm3 = vcmp.eq.s32.totalorder %v819_v37, 1 }
 0x3aa   : > { %v868_v62 = vmul.f32 -1.442695, %v715_v18  ;;  %v717_v57 = vadd.f32 %v716_v5, %v635_v15  ;;  %v788_v2 = vadd.f32 %v787_v9, %v643_v8  ;;  %v2650_v8 = vld [vmem:[#allocation249_spill] sm:$0xff] }
 0x3ac   : > { %1008 = vpow2.f32 %v868_v62  ;;  %v869_v0 = vmul.f32 -1.442695, %v717_v57  ;;  %v870_v3 = vmul.f32 -1.442695, %v788_v2  ;;  %v2649_v62 = vld [vmem:[#allocation250_spill] sm:$0xff] }
 0x3ae   : > { %1010 = vpow2.f32 %v869_v0 }
 0x3af   : > { %1012 = vpow2.f32 %v870_v3 }
 0x3b9   : > { %v1009_v10 = vpop.eup %1008 }
 0x3ba   : > { %v793_v11 = vadd.f32 1.0, %v1009_v10 }
 0x3bb   : > { %v1011_v22 = vpop.eup %1010 }
 0x3bc   : > { %1014 = vrcp.f32 %v793_v11  ;;  %v799_v12 = vadd.f32 1.0, %v1011_v22  ;;  %v1013_v13 = vpop.eup %1012 }
 0x3bd   : > { %1016 = vtanh.f32 %v786_v1  ;;  %v806_v5 = vadd.f32 1.0, %v1013_v13  ;;  %v2652_v1 = vmov %v626_v14 }
 0x3be   : > { %1018 = vrcp.f32 %v799_v12 }
 0x3bf   : > { %1020 = vrcp.f32 %v806_v5 }
 0x3c9   : > { %v1015_v15 = vpop.eup %1014 }
 0x3ca   : > { %v1017_v16 = vpop.eup %1016 }
 0x3cb   : > { %v1019_v18 = vpop.eup %1018  ;;  %v810_v4 = vmul.f32 %v1017_v16, %v1015_v15 }
 0x3cc   : > { %v809_v57 = vmul.f32 %v2649_v62, %v1019_v18  ;;  %v1021_v6 = vpop.eup %1020 }
 0x3ce   : > { %v811_v57 = vadd.f32 %v810_v4, %v809_v57  }
 0x3d0   : > { %1022 = vtanh.f32 %v811_v57 }
 0x3dd   : > { %v1023_v0 = vpop.eup %1022  ;;  %355 = sbr.rel (!%p352_p2) target bundleno = 171 (0xab), region = 72 }
 0x3de   : > { %v813_v62 = vmul.f32 %v1023_v0, %v1021_v6  }
 0x3e0   : > { %v821_v9 = vsel %vm820_vm3, %v813_v62, %v2650_v8  }
 0x3e1   : > { %v2651_v22 = vmov %v821_v9  ;;  %v2653_v37 = vmov (%p352_p2), %v821_v9 }
 0x3e2 PF:  { %822 = vst [vmem:[#allocation9] sm:$0xff] %v1164_v37  ;;  %s1177_s11 = smov [#allocation9]   ;;  %v1164_v37 = vphi %v1797_v37, %v2653_v37  }
 0x3e3   :  { %s829_s12 = sshll.u32 %s1177_s11, 4  ;;  %s830_s12 = int_to_ptr.vmem [resolvable:$true] %s829_s12 }
 0x3e4   :  { %s1084_s13 = scalar_lea.vmem %s830_s12, 128  ;;  %p1089_p4 = scmp.lt.s32.totalorder %s830_s12, %s830_s12 }
 0x3e5   :  { %p1085_p3 = scmp.ne.s32.totalorder %s830_s12, %s1084_s13  ;;  %p1090_p5 = scmp.lt.s32.totalorder %s1084_s13, %s1084_s13 }
 0x3e7   :  { %p1091_p6 = por %p1090_p5, %p1089_p4 }
 0x3e9   :  { %p1092_p7 = pnand %p1091_p6, %p1085_p3 }
 0x3eb   :  { %1095 = shalt.err (!%p1092_p7)
}
 0x3ec   :  { %832 = dma.vmem_to_hbm [thread:$0]  %s830_s12, 128, %s2171_s8, [#allocation5]  }
 0x3ed   :  { %1136 = dma.done.wait [#allocation5], 128  }
 0x3ee   :  { %1137 = vsyncadd [#allocation5], 4294967168 }
 0x3ef   :  { %836 = vsyncpa [#allocation4], 1 }
 0x3f0   :  { %837 = vsyncpa [#allocation7], 1 }
 0x3f1   :  { %838 = vsyncpa [#allocation5], 1 }

</bundles_post_ra>
